<compile_context>
chip_gen: v5e
topology: v5e:2x2
jax: 0.10.0
libtpu: 0.0.40
codegen_flags: <defaults>
</compile_context>

<pallas_src>
import functools

import numpy as np

import jax
import jax.numpy as jnp
from jax.experimental import pallas as pl
from jax.experimental.pallas import tpu as pltpu


# ConvTranspose2d(k=4, stride=2, pad=1):  out index o relates to input index i via
#   i = (o + 1 - k_off) / 2  (integer & in range).  Split by output parity r = o % 2:
#   (r, k_off, delta)  with  i = (o - r)//2 + delta
_ROW_TERMS = ((0, 3, -1), (0, 1, 0), (1, 2, 0), (1, 0, 1))
_COL_TERMS = ((0, 3, -1), (0, 1, 0), (1, 2, 0), (1, 0, 1))


# ----------------------------------------------------------------------------
# Precomputed structural (shape-only) matrices — built with numpy at trace time.
# ----------------------------------------------------------------------------
@functools.lru_cache(maxsize=None)
def _structural_mats(n, w):
    c2, c1 = 2 * w, w
    # per-channel gather matrices for the interleaved lane layouts (lane % C == channel)
    g2 = np.zeros((49 * c2, c2), np.float32)
    g2[np.arange(49 * c2), np.arange(49 * c2) % c2] = 1.0
    g1 = np.zeros((14 * c1, c1), np.float32)
    g1[np.arange(14 * c1), np.arange(14 * c1) % c1] = 1.0
    # 0/1 row-selection matrices for the 4 transposed-conv phase terms
    a2 = np.zeros((4, n * 14, 7 * n), np.float32)   # x0 rows are (h, n), h-major
    a1 = np.zeros((4, n * 14, n * 14), np.float32)  # x1 rows are (n, oh), n-major
    for k, (rh, _kh, dr) in enumerate(_ROW_TERMS):
        for nn in range(n):
            for oh in range(14):                    # conv2: 7 -> 14 rows
                if oh % 2 != rh:
                    continue
                ih = (oh - rh) // 2 + dr
                if 0 <= ih < 7:
                    a2[k, nn * 14 + oh, ih * n + nn] = 1.0
            for p in range(14):                     # conv1: 14 -> 28 rows (p = oh//2)
                ih = p + dr
                if 0 <= ih < 14:
                    a1[k, nn * 14 + p, nn * 14 + ih] = 1.0
    return g2, g1, a2, a1


def _col_struct(in_w, out_w):
    """M[iw, ow, kw] = 1 iff input column iw feeds output column ow via kernel col kw."""
    m = np.zeros((in_w, out_w, 4), np.float32)
    for (rw, kw, dc) in _COL_TERMS:
        for ow in range(out_w):
            if ow % 2 != rw:
                continue
            iw = (ow - rw) // 2 + dc
            if 0 <= iw < in_w:
                m[iw, ow, kw] = 1.0
    return m


# ----------------------------------------------------------------------------
# One-time weight preparation (hoisted out of the per-call path).
# ----------------------------------------------------------------------------
def prepare_params(params):
    fc_w = jnp.asarray(params["fc_w"], jnp.float32)      # (2w*49, q)  PyTorch (out, in)
    fc_b = jnp.asarray(params["fc_b"], jnp.float32)
    w2 = jnp.asarray(params["ct2_w"], jnp.float32)       # (C2, C1, 4, 4)
    b2v = jnp.asarray(params["ct2_b"], jnp.float32)      # (C1,)
    w1 = jnp.asarray(params["ct1_w"], jnp.float32)       # (C1, 1, 4, 4)
    b1v = jnp.asarray(params["ct1_b"], jnp.float32)      # (1,)
    c2, c1 = w2.shape[0], w2.shape[1]

    # fc: transpose + permute output columns so the fc result comes out directly in
    # (h, w, c)-interleaved lane order (kills the view/transpose after fc).
    perm = np.empty((49 * c2,), np.int32)
    for h in range(7):
        for wq in range(7):
            for c in range(c2):
                perm[(h * 7 + wq) * c2 + c] = c * 49 + h * 7 + wq
    fcw = fc_w[perm, :].T.astype(jnp.bfloat16)            # (q, 49*C2)
    fcb = fc_b[perm].reshape(1, 49 * c2)

    # transposed-conv phase weight matrices  B_k[(iw, ci), (ow, co)]
    m2 = _col_struct(7, 14)                                # (7, 14, 4)
    m1 = _col_struct(14, 28)                               # (14, 28, 4)
    b2_k, b1_k = [], []
    for (rh, kh, _dr) in _ROW_TERMS:
        bb = jnp.einsum("iok,cdk->icod", m2, w2[:, :, kh, :])       # (7, C2, 14, C1)
        b2_k.append(bb.reshape(7 * c2, 14 * c1))
        cc = jnp.einsum("iok,ck->ico", m1, w1[:, 0, kh, :])         # (14, C1, 28)
        cc = cc.reshape(14 * c1, 28)
        b1_k.append(jnp.zeros((14 * c1, 2 * 28), cc.dtype)
                    .at[:, rh * 28:(rh + 1) * 28].set(cc))
    b2 = jnp.stack(b2_k).astype(jnp.bfloat16)              # (4, 7*C2, 14*C1)
    b1 = jnp.stack(b1_k).astype(jnp.bfloat16)              # (4, 14*C1, 56)

    return {
        "fcw": fcw, "fcb": fcb,
        "b2": b2, "bias2": jnp.tile(b2v, 14).reshape(1, 14 * c1),   # (1, 14*C1), ow-tiled
        "b1": b1, "bias1": b1v.reshape(1, 1),
        "bn2_g": jnp.asarray(params["bn2_g"], jnp.float32).reshape(1, c2),
        "bn2_b": jnp.asarray(params["bn2_b"], jnp.float32).reshape(1, c2),
        "bn1_g": jnp.asarray(params["bn1_g"], jnp.float32).reshape(1, c1),
        "bn1_b": jnp.asarray(params["bn1_b"], jnp.float32).reshape(1, c1),
    }


# ----------------------------------------------------------------------------
# The fused Pallas kernel (single invocation, everything VMEM-resident).
# ----------------------------------------------------------------------------
def _generator_kernel(z_ref, fcw_ref, fcb_ref,
                      g2_ref, g2t_ref, bn2g_ref, bn2b_ref,
                      a2_ref, b2w_ref, cb2_ref,
                      g1_ref, g1t_ref, bn1g_ref, bn1b_ref,
                      a1_ref, b1w_ref, cb1_ref,
                      o_ref, *, n, c2, c1):
    f32, bf16 = jnp.float32, jnp.bfloat16
    eps = 1e-5
    l0 = 7 * c2      # lanes of one 7-wide image row  (width * C2, interleaved)
    l1 = 14 * c1     # lanes of one 14-wide image row (width * C1, interleaved)

    # ---- fc (Linear); weights pre-permuted so lanes are already (h, w, c)-ordered.
    y = jnp.dot(z_ref[...].astype(bf16), fcw_ref[...],
                preferred_element_type=f32) + fcb_ref[...]               # (N, 49*C2)

    # ---- bn2 (training-mode batch stats, one pass) + ReLU
    inv2 = 1.0 / float(n * 49)
    cs = jnp.sum(y, axis=0, keepdims=True)                               # (1, 49*C2)
    csq = jnp.sum(y * y, axis=0, keepdims=True)
    mu = jnp.dot(cs, g2_ref[...], preferred_element_type=f32) * inv2     # (1, C2)
    var = jnp.dot(csq, g2_ref[...], preferred_element_type=f32) * inv2 - mu * mu
    var = jnp.maximum(var, 0.0)
    sc = bn2g_ref[...] * jax.lax.rsqrt(var + eps)
    sh = bn2b_ref[...] - mu * sc
    scl = jnp.dot(sc, g2t_ref[...], preferred_element_type=f32)          # (1, 49*C2)
    shl = jnp.dot(sh, g2t_ref[...], preferred_element_type=f32)
    act = jnp.maximum(y * scl + shl, 0.0)                                # (N, 49*C2)

    # ---- row-image layout: rows = (h, n) h-major, lanes = w*C2 + c
    x0 = jnp.concatenate([act[:, h * l0:(h + 1) * l0] for h in range(7)], axis=0)
    x0b = x0.astype(bf16)                                                # (7N, 7*C2)

    # ---- ConvTranspose2d #2 (k4 s2 p1) via stride-phase decomposition:
    #         x1 = sum_k A2_k @ x0 @ B2_k  + bias
    x1 = None
    for k in range(4):
        u = jnp.dot(x0b, b2w_ref[k], preferred_element_type=f32)         # (7N, 14*C1)
        v = jnp.dot(a2_ref[k], u, preferred_element_type=f32)            # (N*14, 14*C1)
        x1 = v if x1 is None else x1 + v
    x1 = x1 + cb2_ref[...]                 # per-channel bias, pre-tiled over the 14 cols

    # ---- bn1 (batch stats, one pass) + ReLU
    inv1 = 1.0 / float(n * 196)
    cs1 = jnp.sum(x1, axis=0, keepdims=True)                             # (1, 14*C1)
    csq1 = jnp.sum(x1 * x1, axis=0, keepdims=True)
    mu1 = jnp.dot(cs1, g1_ref[...], preferred_element_type=f32) * inv1   # (1, C1)
    var1 = jnp.dot(csq1, g1_ref[...], preferred_element_type=f32) * inv1 - mu1 * mu1
    var1 = jnp.maximum(var1, 0.0)
    sc1 = bn1g_ref[...] * jax.lax.rsqrt(var1 + eps)
    sh1 = bn1b_ref[...] - mu1 * sc1
    scl1 = jnp.dot(sc1, g1t_ref[...], preferred_element_type=f32)        # (1, 14*C1)
    shl1 = jnp.dot(sh1, g1t_ref[...], preferred_element_type=f32)
    x1a = jnp.maximum(x1 * scl1 + shl1, 0.0)
    x1b = x1a.astype(bf16)                                               # (N*14, 14*C1)

    # ---- ConvTranspose2d #1 (Cout=1) + bias + sigmoid, phase-packed output:
    #         out[(n*14 + p), rh*28 + ow] = g(z)[n, 0, 2p + rh, ow]
    o = None
    for k in range(4):
        u = jnp.dot(x1b, b1w_ref[k], preferred_element_type=f32)         # (N*14, 56)
        v = jnp.dot(a1_ref[k], u, preferred_element_type=f32)
        o = v if o is None else o + v
    o_ref[...] = jax.nn.sigmoid(o + cb1_ref[...])


# ----------------------------------------------------------------------------
# Forward wrapper (one pallas_call; the only post-processing is a pure reshape).
# ----------------------------------------------------------------------------
def generator_forward(z, kparams, w):
    n = z.shape[0]
    c2, c1 = 2 * w, w
    g2, g1, a2, a1 = _structural_mats(n, w)     # numpy constants, built at trace time
    kern = functools.partial(_generator_kernel, n=n, c2=c2, c1=c1)
    out2d = pl.pallas_call(
        kern,
        out_shape=jax.ShapeDtypeStruct((n * 14, 2 * 28), jnp.float32),
        in_specs=[pl.BlockSpec(memory_space=pltpu.MemorySpace.VMEM)] * 17,
        out_specs=pl.BlockSpec(memory_space=pltpu.MemorySpace.VMEM),
    )(
        z.astype(jnp.float32),
        kparams["fcw"], kparams["fcb"],
        jnp.asarray(g2), jnp.asarray(g2.T), kparams["bn2_g"], kparams["bn2_b"],
        jnp.asarray(a2), kparams["b2"], kparams["bias2"],
        jnp.asarray(g1), jnp.asarray(g1.T), kparams["bn1_g"], kparams["bn1_b"],
        jnp.asarray(a1), kparams["b1"], kparams["bias1"],
    )
    # Phase-packed (N*14, 56) -> NCHW (N, 1, 28, 28) is a pure reshape (no transpose).
    return out2d.reshape(n, 1, 28, 28)


# ----------------------------------------------------------------------------
# PyTorch-style init and a pure-JAX reference for validation.
# ----------------------------------------------------------------------------
def init_params(key, w, q):
    ks = jax.random.split(key, 6)
    out_fc = w * 2 * 7 * 7

    def u(k, shape, fan_in):
        bound = 1.0 / float(fan_in) ** 0.5
        return jax.random.uniform(k, shape, jnp.float32, -bound, bound)

    return {
        "fc_w": u(ks[0], (out_fc, q), q),                  # Linear: (out, in)
        "fc_b": u(ks[1], (out_fc,), q),
        "ct2_w": u(ks[2], (2 * w, w, 4, 4), 2 * w * 16),   # ConvT: (Cin, Cout, K, K)
        "ct2_b": u(ks[3], (w,), 2 * w * 16),
        "ct1_w": u(ks[4], (w, 1, 4, 4), w * 16),
        "ct1_b": u(ks[5], (1,), w * 16),
        "bn2_g": jnp.ones((2 * w,), jnp.float32),
        "bn2_b": jnp.zeros((2 * w,), jnp.float32),
        "bn1_g": jnp.ones((w,), jnp.float32),
        "bn1_b": jnp.zeros((w,), jnp.float32),
    }


def _reference_forward(z, params, w):
    n = z.shape[0]

    def bn(x, g, b):   # training-mode batch stats, biased variance, eps=1e-5
        mean = jnp.mean(x, axis=(0, 2, 3), keepdims=True)
        var = jnp.mean(jnp.square(x - mean), axis=(0, 2, 3), keepdims=True)
        return (x - mean) * jax.lax.rsqrt(var + 1e-5) * g.reshape(1, -1, 1, 1) \
            + b.reshape(1, -1, 1, 1)

    def convT(x, wt, bias):   # stride 2, pad 1, k 4 ; wt (Cin, Cout, K, K)
        k = wt.shape[-1]
        w_conv = jnp.transpose(wt[:, :, ::-1, ::-1], (1, 0, 2, 3))   # (Cout, Cin, K, K)
        y = jax.lax.conv_general_dilated(
            x, w_conv, window_strides=(1, 1),
            padding=[(k - 2, k - 2), (k - 2, k - 2)], lhs_dilation=(2, 2),
            dimension_numbers=("NCHW", "OIHW", "NCHW"))
        return y + bias.reshape(1, -1, 1, 1)

    y = z @ params["fc_w"].T + params["fc_b"]
    x = y.reshape(n, 2 * w, 7, 7)
    x = jnp.maximum(bn(x, params["bn2_g"], params["bn2_b"]), 0.0)
    x = convT(x, params["ct2_w"], params["ct2_b"])
    x = jnp.maximum(bn(x, params["bn1_g"], params["bn1_b"]), 0.0)
    x = convT(x, params["ct1_w"], params["ct1_b"])
    return jax.nn.sigmoid(x)


if __name__ == "__main__":
    w_ch, q_lat, batch = 8, 32, 2
    key = jax.random.PRNGKey(0)
    pkey, zkey = jax.random.split(key)
    params = init_params(pkey, w_ch, q_lat)
    z = jax.random.normal(zkey, (batch, q_lat), jnp.float32)

    kparams = prepare_params(params)                      # one-time weight preparation
    fwd = jax.jit(functools.partial(generator_forward, w=w_ch))
    out = jax.block_until_ready(fwd(z, kparams))

    assert out.shape == (batch, 1, 28, 28), out.shape
    assert bool(jnp.isfinite(out).all())
    assert bool((out >= 0.0).all()) and bool((out <= 1.0).all())   # sigmoid range

    # Cross-check against a pure-JAX reference of the PyTorch forward
    # (loose tolerance: kernel uses bf16 weight matmuls with f32 accumulation).
    ref = jax.jit(functools.partial(_reference_forward, w=w_ch))(z, params)
    max_err = float(jnp.max(jnp.abs(out - ref)))
    assert max_err < 5e-2, f"mismatch vs reference (max abs err {max_err})"

    print("KERNEL_OK")
</pallas_src>

<mosaic_0001>
module attributes {stable_mosaic.version = 11 : i64} {
  func.func @_generator_kernel(%arg0: memref<2x32xf32, #tpu.memory_space<vmem>>, %arg1: memref<32x784xbf16, #tpu.memory_space<vmem>>, %arg2: memref<1x784xf32, #tpu.memory_space<vmem>>, %arg3: memref<784x16xf32, #tpu.memory_space<vmem>>, %arg4: memref<16x784xf32, #tpu.memory_space<vmem>>, %arg5: memref<1x16xf32, #tpu.memory_space<vmem>>, %arg6: memref<1x16xf32, #tpu.memory_space<vmem>>, %arg7: memref<4x28x14xf32, #tpu.memory_space<vmem>>, %arg8: memref<4x112x112xbf16, #tpu.memory_space<vmem>>, %arg9: memref<1x112xf32, #tpu.memory_space<vmem>>, %arg10: memref<112x8xf32, #tpu.memory_space<vmem>>, %arg11: memref<8x112xf32, #tpu.memory_space<vmem>>, %arg12: memref<1x8xf32, #tpu.memory_space<vmem>>, %arg13: memref<1x8xf32, #tpu.memory_space<vmem>>, %arg14: memref<4x28x28xf32, #tpu.memory_space<vmem>>, %arg15: memref<4x112x56xbf16, #tpu.memory_space<vmem>>, %arg16: memref<1x1xf32, #tpu.memory_space<vmem>>, %arg17: memref<28x56xf32, #tpu.memory_space<vmem>>) attributes {dimension_semantics = [], scalar_prefetch = 0 : i64, scratch_operands = 0 : i64, tpu.core_type = #tpu.core_type<tc>} {
    %c0 = arith.constant 0 : index
    %c0_0 = arith.constant 0 : index
    %0 = vector.load %arg0[%c0, %c0_0] : memref<2x32xf32, #tpu.memory_space<vmem>>, vector<2x32xf32>
    %1 = arith.truncf %0 : vector<2x32xf32> to vector<2x32xbf16>
    %c0_1 = arith.constant 0 : index
    %c0_2 = arith.constant 0 : index
    %2 = vector.load %arg1[%c0_1, %c0_2] : memref<32x784xbf16, #tpu.memory_space<vmem>>, vector<32x784xbf16>
    %cst = arith.constant dense<0.000000e+00> : vector<2x784xf32>
    %3 = tpu.matmul %1, %2, %cst {dimension_numbers = #tpu.dot_dimension_numbers<[1], [0], [0], [1], [0, 0, 1, 1], [], []>} : vector<2x32xbf16>, vector<32x784xbf16>, vector<2x784xf32> -> vector<2x784xf32>
    %c0_3 = arith.constant 0 : index
    %c0_4 = arith.constant 0 : index
    %4 = vector.load %arg2[%c0_3, %c0_4] : memref<1x784xf32, #tpu.memory_space<vmem>>, vector<1x784xf32>
    %5 = vector.broadcast %4 : vector<1x784xf32> to vector<2x784xf32>
    %6 = arith.addf %3, %5 : vector<2x784xf32>
    %cst_5 = arith.constant dense<0.000000e+00> : vector<784xf32>
    %7 = vector.multi_reduction <add>, %6, %cst_5 [0] : vector<2x784xf32> to vector<784xf32>
    %8 = vector.shape_cast %7 : vector<784xf32> to vector<1x784xf32>
    %9 = arith.mulf %6, %6 : vector<2x784xf32>
    %cst_6 = arith.constant dense<0.000000e+00> : vector<784xf32>
    %10 = vector.multi_reduction <add>, %9, %cst_6 [0] : vector<2x784xf32> to vector<784xf32>
    %11 = vector.shape_cast %10 : vector<784xf32> to vector<1x784xf32>
    %c0_7 = arith.constant 0 : index
    %c0_8 = arith.constant 0 : index
    %12 = vector.load %arg3[%c0_7, %c0_8] : memref<784x16xf32, #tpu.memory_space<vmem>>, vector<784x16xf32>
    %cst_9 = arith.constant dense<0.000000e+00> : vector<1x16xf32>
    %13 = tpu.matmul %8, %12, %cst_9 {dimension_numbers = #tpu.dot_dimension_numbers<[1], [0], [0], [1], [0, 0, 1, 1], [], []>} : vector<1x784xf32>, vector<784x16xf32>, vector<1x16xf32> -> vector<1x16xf32>
    %cst_10 = arith.constant 0.0102040814 : f32
    %14 = vector.broadcast %cst_10 : f32 to vector<1x16xf32>
    %15 = arith.mulf %13, %14 : vector<1x16xf32>
    %c0_11 = arith.constant 0 : index
    %c0_12 = arith.constant 0 : index
    %16 = vector.load %arg3[%c0_11, %c0_12] : memref<784x16xf32, #tpu.memory_space<vmem>>, vector<784x16xf32>
    %cst_13 = arith.constant dense<0.000000e+00> : vector<1x16xf32>
    %17 = tpu.matmul %11, %16, %cst_13 {dimension_numbers = #tpu.dot_dimension_numbers<[1], [0], [0], [1], [0, 0, 1, 1], [], []>} : vector<1x784xf32>, vector<784x16xf32>, vector<1x16xf32> -> vector<1x16xf32>
    %cst_14 = arith.constant 0.0102040814 : f32
    %18 = vector.broadcast %cst_14 : f32 to vector<1x16xf32>
    %19 = arith.mulf %17, %18 : vector<1x16xf32>
    %20 = arith.mulf %15, %15 : vector<1x16xf32>
    %21 = arith.subf %19, %20 : vector<1x16xf32>
    %cst_15 = arith.constant 0.000000e+00 : f32
    %22 = vector.broadcast %cst_15 : f32 to vector<1x16xf32>
    %23 = arith.maximumf %21, %22 : vector<1x16xf32>
    %c0_16 = arith.constant 0 : index
    %c0_17 = arith.constant 0 : index
    %24 = vector.load %arg5[%c0_16, %c0_17] : memref<1x16xf32, #tpu.memory_space<vmem>>, vector<1x16xf32>
    %cst_18 = arith.constant 9.99999974E-6 : f32
    %25 = vector.broadcast %cst_18 : f32 to vector<1x16xf32>
    %26 = arith.addf %23, %25 : vector<1x16xf32>
    %27 = math.rsqrt %26 : vector<1x16xf32>
    %28 = arith.mulf %24, %27 : vector<1x16xf32>
    %c0_19 = arith.constant 0 : index
    %c0_20 = arith.constant 0 : index
    %29 = vector.load %arg6[%c0_19, %c0_20] : memref<1x16xf32, #tpu.memory_space<vmem>>, vector<1x16xf32>
    %30 = arith.mulf %15, %28 : vector<1x16xf32>
    %31 = arith.subf %29, %30 : vector<1x16xf32>
    %c0_21 = arith.constant 0 : index
    %c0_22 = arith.constant 0 : index
    %32 = vector.load %arg4[%c0_21, %c0_22] : memref<16x784xf32, #tpu.memory_space<vmem>>, vector<16x784xf32>
    %cst_23 = arith.constant dense<0.000000e+00> : vector<1x784xf32>
    %33 = tpu.matmul %28, %32, %cst_23 {dimension_numbers = #tpu.dot_dimension_numbers<[1], [0], [0], [1], [0, 0, 1, 1], [], []>} : vector<1x16xf32>, vector<16x784xf32>, vector<1x784xf32> -> vector<1x784xf32>
    %c0_24 = arith.constant 0 : index
    %c0_25 = arith.constant 0 : index
    %34 = vector.load %arg4[%c0_24, %c0_25] : memref<16x784xf32, #tpu.memory_space<vmem>>, vector<16x784xf32>
    %cst_26 = arith.constant dense<0.000000e+00> : vector<1x784xf32>
    %35 = tpu.matmul %31, %34, %cst_26 {dimension_numbers = #tpu.dot_dimension_numbers<[1], [0], [0], [1], [0, 0, 1, 1], [], []>} : vector<1x16xf32>, vector<16x784xf32>, vector<1x784xf32> -> vector<1x784xf32>
    %36 = vector.broadcast %33 : vector<1x784xf32> to vector<2x784xf32>
    %37 = arith.mulf %6, %36 : vector<2x784xf32>
    %38 = vector.broadcast %35 : vector<1x784xf32> to vector<2x784xf32>
    %39 = arith.addf %37, %38 : vector<2x784xf32>
    %cst_27 = arith.constant 0.000000e+00 : f32
    %40 = vector.broadcast %cst_27 : f32 to vector<2x784xf32>
    %41 = arith.maximumf %39, %40 : vector<2x784xf32>
    %42 = vector.extract_strided_slice %41 {offsets = [0, 0], sizes = [2, 112], strides = [1, 1]} : vector<2x784xf32> to vector<2x112xf32>
    %43 = vector.extract_strided_slice %41 {offsets = [0, 112], sizes = [2, 112], strides = [1, 1]} : vector<2x784xf32> to vector<2x112xf32>
    %44 = vector.extract_strided_slice %41 {offsets = [0, 224], sizes = [2, 112], strides = [1, 1]} : vector<2x784xf32> to vector<2x112xf32>
    %45 = vector.extract_strided_slice %41 {offsets = [0, 336], sizes = [2, 112], strides = [1, 1]} : vector<2x784xf32> to vector<2x112xf32>
    %46 = vector.extract_strided_slice %41 {offsets = [0, 448], sizes = [2, 112], strides = [1, 1]} : vector<2x784xf32> to vector<2x112xf32>
    %47 = vector.extract_strided_slice %41 {offsets = [0, 560], sizes = [2, 112], strides = [1, 1]} : vector<2x784xf32> to vector<2x112xf32>
    %48 = vector.extract_strided_slice %41 {offsets = [0, 672], sizes = [2, 112], strides = [1, 1]} : vector<2x784xf32> to vector<2x112xf32>
    %49 = tpu.concatenate %42, %43, %44, %45, %46, %47, %48 in 0 : vector<2x112xf32>, vector<2x112xf32>, vector<2x112xf32>, vector<2x112xf32>, vector<2x112xf32>, vector<2x112xf32>, vector<2x112xf32> -> vector<14x112xf32>
    %50 = arith.truncf %49 : vector<14x112xf32> to vector<14x112xbf16>
    %c0_28 = arith.constant 0 : index
    %c0_29 = arith.constant 0 : index
    %c0_30 = arith.constant 0 : index
    %51 = vector.load %arg8[%c0_28, %c0_29, %c0_30] : memref<4x112x112xbf16, #tpu.memory_space<vmem>>, vector<1x112x112xbf16>
    %52 = vector.shape_cast %51 : vector<1x112x112xbf16> to vector<112x112xbf16>
    %cst_31 = arith.constant dense<0.000000e+00> : vector<14x112xf32>
    %53 = tpu.matmul %50, %52, %cst_31 {dimension_numbers = #tpu.dot_dimension_numbers<[1], [0], [0], [1], [0, 0, 1, 1], [], []>} : vector<14x112xbf16>, vector<112x112xbf16>, vector<14x112xf32> -> vector<14x112xf32>
    %c0_32 = arith.constant 0 : index
    %c0_33 = arith.constant 0 : index
    %c0_34 = arith.constant 0 : index
    %54 = vector.load %arg7[%c0_32, %c0_33, %c0_34] : memref<4x28x14xf32, #tpu.memory_space<vmem>>, vector<1x28x14xf32>
    %55 = vector.shape_cast %54 : vector<1x28x14xf32> to vector<28x14xf32>
    %cst_35 = arith.constant dense<0.000000e+00> : vector<28x112xf32>
    %56 = tpu.matmul %55, %53, %cst_35 {dimension_numbers = #tpu.dot_dimension_numbers<[1], [0], [0], [1], [0, 0, 1, 1], [], []>} : vector<28x14xf32>, vector<14x112xf32>, vector<28x112xf32> -> vector<28x112xf32>
    %c1 = arith.constant 1 : index
    %c0_36 = arith.constant 0 : index
    %c0_37 = arith.constant 0 : index
    %57 = vector.load %arg8[%c1, %c0_36, %c0_37] : memref<4x112x112xbf16, #tpu.memory_space<vmem>>, vector<1x112x112xbf16>
    %58 = vector.shape_cast %57 : vector<1x112x112xbf16> to vector<112x112xbf16>
    %cst_38 = arith.constant dense<0.000000e+00> : vector<14x112xf32>
    %59 = tpu.matmul %50, %58, %cst_38 {dimension_numbers = #tpu.dot_dimension_numbers<[1], [0], [0], [1], [0, 0, 1, 1], [], []>} : vector<14x112xbf16>, vector<112x112xbf16>, vector<14x112xf32> -> vector<14x112xf32>
    %c1_39 = arith.constant 1 : index
    %c0_40 = arith.constant 0 : index
    %c0_41 = arith.constant 0 : index
    %60 = vector.load %arg7[%c1_39, %c0_40, %c0_41] : memref<4x28x14xf32, #tpu.memory_space<vmem>>, vector<1x28x14xf32>
    %61 = vector.shape_cast %60 : vector<1x28x14xf32> to vector<28x14xf32>
    %cst_42 = arith.constant dense<0.000000e+00> : vector<28x112xf32>
    %62 = tpu.matmul %61, %59, %cst_42 {dimension_numbers = #tpu.dot_dimension_numbers<[1], [0], [0], [1], [0, 0, 1, 1], [], []>} : vector<28x14xf32>, vector<14x112xf32>, vector<28x112xf32> -> vector<28x112xf32>
    %63 = arith.addf %56, %62 : vector<28x112xf32>
    %c2 = arith.constant 2 : index
    %c0_43 = arith.constant 0 : index
    %c0_44 = arith.constant 0 : index
    %64 = vector.load %arg8[%c2, %c0_43, %c0_44] : memref<4x112x112xbf16, #tpu.memory_space<vmem>>, vector<1x112x112xbf16>
    %65 = vector.shape_cast %64 : vector<1x112x112xbf16> to vector<112x112xbf16>
    %cst_45 = arith.constant dense<0.000000e+00> : vector<14x112xf32>
    %66 = tpu.matmul %50, %65, %cst_45 {dimension_numbers = #tpu.dot_dimension_numbers<[1], [0], [0], [1], [0, 0, 1, 1], [], []>} : vector<14x112xbf16>, vector<112x112xbf16>, vector<14x112xf32> -> vector<14x112xf32>
    %c2_46 = arith.constant 2 : index
    %c0_47 = arith.constant 0 : index
    %c0_48 = arith.constant 0 : index
    %67 = vector.load %arg7[%c2_46, %c0_47, %c0_48] : memref<4x28x14xf32, #tpu.memory_space<vmem>>, vector<1x28x14xf32>
    %68 = vector.shape_cast %67 : vector<1x28x14xf32> to vector<28x14xf32>
    %cst_49 = arith.constant dense<0.000000e+00> : vector<28x112xf32>
    %69 = tpu.matmul %68, %66, %cst_49 {dimension_numbers = #tpu.dot_dimension_numbers<[1], [0], [0], [1], [0, 0, 1, 1], [], []>} : vector<28x14xf32>, vector<14x112xf32>, vector<28x112xf32> -> vector<28x112xf32>
    %70 = arith.addf %63, %69 : vector<28x112xf32>
    %c3 = arith.constant 3 : index
    %c0_50 = arith.constant 0 : index
    %c0_51 = arith.constant 0 : index
    %71 = vector.load %arg8[%c3, %c0_50, %c0_51] : memref<4x112x112xbf16, #tpu.memory_space<vmem>>, vector<1x112x112xbf16>
    %72 = vector.shape_cast %71 : vector<1x112x112xbf16> to vector<112x112xbf16>
    %cst_52 = arith.constant dense<0.000000e+00> : vector<14x112xf32>
    %73 = tpu.matmul %50, %72, %cst_52 {dimension_numbers = #tpu.dot_dimension_numbers<[1], [0], [0], [1], [0, 0, 1, 1], [], []>} : vector<14x112xbf16>, vector<112x112xbf16>, vector<14x112xf32> -> vector<14x112xf32>
    %c3_53 = arith.constant 3 : index
    %c0_54 = arith.constant 0 : index
    %c0_55 = arith.constant 0 : index
    %74 = vector.load %arg7[%c3_53, %c0_54, %c0_55] : memref<4x28x14xf32, #tpu.memory_space<vmem>>, vector<1x28x14xf32>
    %75 = vector.shape_cast %74 : vector<1x28x14xf32> to vector<28x14xf32>
    %cst_56 = arith.constant dense<0.000000e+00> : vector<28x112xf32>
    %76 = tpu.matmul %75, %73, %cst_56 {dimension_numbers = #tpu.dot_dimension_numbers<[1], [0], [0], [1], [0, 0, 1, 1], [], []>} : vector<28x14xf32>, vector<14x112xf32>, vector<28x112xf32> -> vector<28x112xf32>
    %77 = arith.addf %70, %76 : vector<28x112xf32>
    %c0_57 = arith.constant 0 : index
    %c0_58 = arith.constant 0 : index
    %78 = vector.load %arg9[%c0_57, %c0_58] : memref<1x112xf32, #tpu.memory_space<vmem>>, vector<1x112xf32>
    %79 = vector.broadcast %78 : vector<1x112xf32> to vector<28x112xf32>
    %80 = arith.addf %77, %79 : vector<28x112xf32>
    %cst_59 = arith.constant dense<0.000000e+00> : vector<112xf32>
    %81 = vector.multi_reduction <add>, %80, %cst_59 [0] : vector<28x112xf32> to vector<112xf32>
    %82 = vector.shape_cast %81 : vector<112xf32> to vector<1x112xf32>
    %83 = arith.mulf %80, %80 : vector<28x112xf32>
    %cst_60 = arith.constant dense<0.000000e+00> : vector<112xf32>
    %84 = vector.multi_reduction <add>, %83, %cst_60 [0] : vector<28x112xf32> to vector<112xf32>
    %85 = vector.shape_cast %84 : vector<112xf32> to vector<1x112xf32>
    %c0_61 = arith.constant 0 : index
    %c0_62 = arith.constant 0 : index
    %86 = vector.load %arg10[%c0_61, %c0_62] : memref<112x8xf32, #tpu.memory_space<vmem>>, vector<112x8xf32>
    %cst_63 = arith.constant dense<0.000000e+00> : vector<1x8xf32>
    %87 = tpu.matmul %82, %86, %cst_63 {dimension_numbers = #tpu.dot_dimension_numbers<[1], [0], [0], [1], [0, 0, 1, 1], [], []>} : vector<1x112xf32>, vector<112x8xf32>, vector<1x8xf32> -> vector<1x8xf32>
    %cst_64 = arith.constant 0.00255102036 : f32
    %88 = vector.broadcast %cst_64 : f32 to vector<1x8xf32>
    %89 = arith.mulf %87, %88 : vector<1x8xf32>
    %c0_65 = arith.constant 0 : index
    %c0_66 = arith.constant 0 : index
    %90 = vector.load %arg10[%c0_65, %c0_66] : memref<112x8xf32, #tpu.memory_space<vmem>>, vector<112x8xf32>
    %cst_67 = arith.constant dense<0.000000e+00> : vector<1x8xf32>
    %91 = tpu.matmul %85, %90, %cst_67 {dimension_numbers = #tpu.dot_dimension_numbers<[1], [0], [0], [1], [0, 0, 1, 1], [], []>} : vector<1x112xf32>, vector<112x8xf32>, vector<1x8xf32> -> vector<1x8xf32>
    %cst_68 = arith.constant 0.00255102036 : f32
    %92 = vector.broadcast %cst_68 : f32 to vector<1x8xf32>
    %93 = arith.mulf %91, %92 : vector<1x8xf32>
    %94 = arith.mulf %89, %89 : vector<1x8xf32>
    %95 = arith.subf %93, %94 : vector<1x8xf32>
    %cst_69 = arith.constant 0.000000e+00 : f32
    %96 = vector.broadcast %cst_69 : f32 to vector<1x8xf32>
    %97 = arith.maximumf %95, %96 : vector<1x8xf32>
    %c0_70 = arith.constant 0 : index
    %c0_71 = arith.constant 0 : index
    %98 = vector.load %arg12[%c0_70, %c0_71] : memref<1x8xf32, #tpu.memory_space<vmem>>, vector<1x8xf32>
    %cst_72 = arith.constant 9.99999974E-6 : f32
    %99 = vector.broadcast %cst_72 : f32 to vector<1x8xf32>
    %100 = arith.addf %97, %99 : vector<1x8xf32>
    %101 = math.rsqrt %100 : vector<1x8xf32>
    %102 = arith.mulf %98, %101 : vector<1x8xf32>
    %c0_73 = arith.constant 0 : index
    %c0_74 = arith.constant 0 : index
    %103 = vector.load %arg13[%c0_73, %c0_74] : memref<1x8xf32, #tpu.memory_space<vmem>>, vector<1x8xf32>
    %104 = arith.mulf %89, %102 : vector<1x8xf32>
    %105 = arith.subf %103, %104 : vector<1x8xf32>
    %c0_75 = arith.constant 0 : index
    %c0_76 = arith.constant 0 : index
    %106 = vector.load %arg11[%c0_75, %c0_76] : memref<8x112xf32, #tpu.memory_space<vmem>>, vector<8x112xf32>
    %cst_77 = arith.constant dense<0.000000e+00> : vector<1x112xf32>
    %107 = tpu.matmul %102, %106, %cst_77 {dimension_numbers = #tpu.dot_dimension_numbers<[1], [0], [0], [1], [0, 0, 1, 1], [], []>} : vector<1x8xf32>, vector<8x112xf32>, vector<1x112xf32> -> vector<1x112xf32>
    %c0_78 = arith.constant 0 : index
    %c0_79 = arith.constant 0 : index
    %108 = vector.load %arg11[%c0_78, %c0_79] : memref<8x112xf32, #tpu.memory_space<vmem>>, vector<8x112xf32>
    %cst_80 = arith.constant dense<0.000000e+00> : vector<1x112xf32>
    %109 = tpu.matmul %105, %108, %cst_80 {dimension_numbers = #tpu.dot_dimension_numbers<[1], [0], [0], [1], [0, 0, 1, 1], [], []>} : vector<1x8xf32>, vector<8x112xf32>, vector<1x112xf32> -> vector<1x112xf32>
    %110 = vector.broadcast %107 : vector<1x112xf32> to vector<28x112xf32>
    %111 = arith.mulf %80, %110 : vector<28x112xf32>
    %112 = vector.broadcast %109 : vector<1x112xf32> to vector<28x112xf32>
    %113 = arith.addf %111, %112 : vector<28x112xf32>
    %cst_81 = arith.constant 0.000000e+00 : f32
    %114 = vector.broadcast %cst_81 : f32 to vector<28x112xf32>
    %115 = arith.maximumf %113, %114 : vector<28x112xf32>
    %116 = arith.truncf %115 : vector<28x112xf32> to vector<28x112xbf16>
    %c0_82 = arith.constant 0 : index
    %c0_83 = arith.constant 0 : index
    %c0_84 = arith.constant 0 : index
    %117 = vector.load %arg15[%c0_82, %c0_83, %c0_84] : memref<4x112x56xbf16, #tpu.memory_space<vmem>>, vector<1x112x56xbf16>
    %118 = vector.shape_cast %117 : vector<1x112x56xbf16> to vector<112x56xbf16>
    %cst_85 = arith.constant dense<0.000000e+00> : vector<28x56xf32>
    %119 = tpu.matmul %116, %118, %cst_85 {dimension_numbers = #tpu.dot_dimension_numbers<[1], [0], [0], [1], [0, 0, 1, 1], [], []>} : vector<28x112xbf16>, vector<112x56xbf16>, vector<28x56xf32> -> vector<28x56xf32>
    %c0_86 = arith.constant 0 : index
    %c0_87 = arith.constant 0 : index
    %c0_88 = arith.constant 0 : index
    %120 = vector.load %arg14[%c0_86, %c0_87, %c0_88] : memref<4x28x28xf32, #tpu.memory_space<vmem>>, vector<1x28x28xf32>
    %121 = vector.shape_cast %120 : vector<1x28x28xf32> to vector<28x28xf32>
    %cst_89 = arith.constant dense<0.000000e+00> : vector<28x56xf32>
    %122 = tpu.matmul %121, %119, %cst_89 {dimension_numbers = #tpu.dot_dimension_numbers<[1], [0], [0], [1], [0, 0, 1, 1], [], []>} : vector<28x28xf32>, vector<28x56xf32>, vector<28x56xf32> -> vector<28x56xf32>
    %c1_90 = arith.constant 1 : index
    %c0_91 = arith.constant 0 : index
    %c0_92 = arith.constant 0 : index
    %123 = vector.load %arg15[%c1_90, %c0_91, %c0_92] : memref<4x112x56xbf16, #tpu.memory_space<vmem>>, vector<1x112x56xbf16>
    %124 = vector.shape_cast %123 : vector<1x112x56xbf16> to vector<112x56xbf16>
    %cst_93 = arith.constant dense<0.000000e+00> : vector<28x56xf32>
    %125 = tpu.matmul %116, %124, %cst_93 {dimension_numbers = #tpu.dot_dimension_numbers<[1], [0], [0], [1], [0, 0, 1, 1], [], []>} : vector<28x112xbf16>, vector<112x56xbf16>, vector<28x56xf32> -> vector<28x56xf32>
    %c1_94 = arith.constant 1 : index
    %c0_95 = arith.constant 0 : index
    %c0_96 = arith.constant 0 : index
    %126 = vector.load %arg14[%c1_94, %c0_95, %c0_96] : memref<4x28x28xf32, #tpu.memory_space<vmem>>, vector<1x28x28xf32>
    %127 = vector.shape_cast %126 : vector<1x28x28xf32> to vector<28x28xf32>
    %cst_97 = arith.constant dense<0.000000e+00> : vector<28x56xf32>
    %128 = tpu.matmul %127, %125, %cst_97 {dimension_numbers = #tpu.dot_dimension_numbers<[1], [0], [0], [1], [0, 0, 1, 1], [], []>} : vector<28x28xf32>, vector<28x56xf32>, vector<28x56xf32> -> vector<28x56xf32>
    %129 = arith.addf %122, %128 : vector<28x56xf32>
    %c2_98 = arith.constant 2 : index
    %c0_99 = arith.constant 0 : index
    %c0_100 = arith.constant 0 : index
    %130 = vector.load %arg15[%c2_98, %c0_99, %c0_100] : memref<4x112x56xbf16, #tpu.memory_space<vmem>>, vector<1x112x56xbf16>
    %131 = vector.shape_cast %130 : vector<1x112x56xbf16> to vector<112x56xbf16>
    %cst_101 = arith.constant dense<0.000000e+00> : vector<28x56xf32>
    %132 = tpu.matmul %116, %131, %cst_101 {dimension_numbers = #tpu.dot_dimension_numbers<[1], [0], [0], [1], [0, 0, 1, 1], [], []>} : vector<28x112xbf16>, vector<112x56xbf16>, vector<28x56xf32> -> vector<28x56xf32>
    %c2_102 = arith.constant 2 : index
    %c0_103 = arith.constant 0 : index
    %c0_104 = arith.constant 0 : index
    %133 = vector.load %arg14[%c2_102, %c0_103, %c0_104] : memref<4x28x28xf32, #tpu.memory_space<vmem>>, vector<1x28x28xf32>
    %134 = vector.shape_cast %133 : vector<1x28x28xf32> to vector<28x28xf32>
    %cst_105 = arith.constant dense<0.000000e+00> : vector<28x56xf32>
    %135 = tpu.matmul %134, %132, %cst_105 {dimension_numbers = #tpu.dot_dimension_numbers<[1], [0], [0], [1], [0, 0, 1, 1], [], []>} : vector<28x28xf32>, vector<28x56xf32>, vector<28x56xf32> -> vector<28x56xf32>
    %136 = arith.addf %129, %135 : vector<28x56xf32>
    %c3_106 = arith.constant 3 : index
    %c0_107 = arith.constant 0 : index
    %c0_108 = arith.constant 0 : index
    %137 = vector.load %arg15[%c3_106, %c0_107, %c0_108] : memref<4x112x56xbf16, #tpu.memory_space<vmem>>, vector<1x112x56xbf16>
    %138 = vector.shape_cast %137 : vector<1x112x56xbf16> to vector<112x56xbf16>
    %cst_109 = arith.constant dense<0.000000e+00> : vector<28x56xf32>
    %139 = tpu.matmul %116, %138, %cst_109 {dimension_numbers = #tpu.dot_dimension_numbers<[1], [0], [0], [1], [0, 0, 1, 1], [], []>} : vector<28x112xbf16>, vector<112x56xbf16>, vector<28x56xf32> -> vector<28x56xf32>
    %c3_110 = arith.constant 3 : index
    %c0_111 = arith.constant 0 : index
    %c0_112 = arith.constant 0 : index
    %140 = vector.load %arg14[%c3_110, %c0_111, %c0_112] : memref<4x28x28xf32, #tpu.memory_space<vmem>>, vector<1x28x28xf32>
    %141 = vector.shape_cast %140 : vector<1x28x28xf32> to vector<28x28xf32>
    %cst_113 = arith.constant dense<0.000000e+00> : vector<28x56xf32>
    %142 = tpu.matmul %141, %139, %cst_113 {dimension_numbers = #tpu.dot_dimension_numbers<[1], [0], [0], [1], [0, 0, 1, 1], [], []>} : vector<28x28xf32>, vector<28x56xf32>, vector<28x56xf32> -> vector<28x56xf32>
    %143 = arith.addf %136, %142 : vector<28x56xf32>
    %c0_114 = arith.constant 0 : index
    %c0_115 = arith.constant 0 : index
    %144 = vector.load %arg16[%c0_114, %c0_115] : memref<1x1xf32, #tpu.memory_space<vmem>>, vector<1x1xf32>
    %145 = vector.broadcast %144 : vector<1x1xf32> to vector<28x56xf32>
    %146 = arith.addf %143, %145 : vector<28x56xf32>
    %147 = arith.negf %146 : vector<28x56xf32>
    %148 = math.exp %147 : vector<28x56xf32>
    %cst_116 = arith.constant 1.000000e+00 : f32
    %149 = vector.broadcast %cst_116 : f32 to vector<28x56xf32>
    %150 = arith.addf %149, %148 : vector<28x56xf32>
    %151 = arith.divf %149, %150 : vector<28x56xf32>
    %c0_117 = arith.constant 0 : index
    %c0_118 = arith.constant 0 : index
    %152 = vector.load %arg17[%c0_117, %c0_118] : memref<28x56xf32, #tpu.memory_space<vmem>>, vector<28x56xf32>
    tpu.vector_store %arg17[%c0_117, %c0_118], %151 {strides = array<i32>} : memref<28x56xf32, #tpu.memory_space<vmem>>, vector<28x56xf32>,
    return
  }
}

</mosaic_0001>

<bundles_post_ra>
// kernel: generator_forward.1
= control target key start
LH: loop header
LB: loop body
LE: loop exit
PB: predicated region body
PF: predicated region fallthrough
CT: control target
= control target key end

     0   :  { %s4484_s0 = inlined_call_operand.vmem [shape: f32[2,32], index: 0, kind: input, shape index: {}]   ;;  %s4485_s1 = inlined_call_operand.vmem [shape: bf16[32,784], index: 1, kind: input, shape index: {}]   ;;  %s4486_s2 = inlined_call_operand.hbm [shape: f32[1,784], index: 2, kind: input, shape index: {}]   ;;  %s4487_s3 = inlined_call_operand.hbm [shape: f32[784,16], index: 3, kind: input, shape index: {}]   ;;  %s4488_s4 = inlined_call_operand.hbm [shape: f32[16,784], index: 4, kind: input, shape index: {}]   ;;  %s4489_s5 = inlined_call_operand.vmem [shape: f32[1,16], index: 5, kind: input, shape index: {}]   ;;  %s4490_s6 = inlined_call_operand.hbm [shape: f32[1,16], index: 6, kind: input, shape index: {}]   ;;  %s4491_s7 = inlined_call_operand.hbm [shape: f32[4,28,14], index: 7, kind: input, shape index: {}]   ;;  %s4492_s8 = inlined_call_operand.vmem [shape: bf16[4,112,112], index: 8, kind: input, shape index: {}]   ;;  %s4493_s9 = inlined_call_operand.hbm [shape: f32[1,112], index: 9, kind: input, shape index: {}]   ;;  %s4494_s10 = inlined_call_operand.hbm [shape: f32[112,8], index: 10, kind: input, shape index: {}]   ;;  %s4495_s11 = inlined_call_operand.vmem [shape: f32[8,112], index: 11, kind: input, shape index: {}]   ;;  %s4496_s12 = inlined_call_operand.hbm [shape: f32[1,8], index: 12, kind: input, shape index: {}]   ;;  %s4497_s13 = inlined_call_operand.hbm [shape: f32[1,8], index: 13, kind: input, shape index: {}]   ;;  %s4498_s14 = inlined_call_operand.hbm [shape: f32[4,28,28], index: 14, kind: input, shape index: {}]   ;;  %s4499_s15 = inlined_call_operand.vmem [shape: bf16[4,112,56], index: 15, kind: input, shape index: {}]   ;;  %s4500_s16 = inlined_call_operand.<no memory space> [shape: f32[1,1], index: 16, kind: input, shape index: {}]   ;;  %s4501_s17 = inlined_call_operand.vmem [shape: f32[28,56], index: 17, kind: output, shape index: {}]  }
   0x1   :  { %4551 = sst [smem:[#allocation73_spill]] %s4484_s0  ;;  %v22_v0 = vstv %s4500_s16 }
   0x2   :  { %4552 = sst [smem:[#allocation74_spill]] %s4485_s1  ;;  %23 = vst [vmem:[#allocation2] sm:$0x1] %v22_v0 }
   0x3   :  { %24 = vsyncpa [#allocation4], 0 }
   0x4   :  { %25 = vsyncpa [#allocation6], 0 }
   0x5   :  { %26 = vsyncpa [#allocation9], 0 }
   0x6   :  { %27 = vsyncpa [#allocation12], 0 }
   0x7   :  { %28 = vsyncpa [#allocation15], 0  ;;  %s49_s28 = sshll.u32 %s4487_s3, 4  ;;  %s50_s28 = int_to_ptr.hbm [resolvable:$true] %s49_s28 }
   0x8   :  { %29 = vsyncpa [#allocation18], 0  ;;  %s3453_s29 = smov [#allocation5]   ;;  %s78_s19 = sshll.u32 %s4490_s6, 4  ;;  %s79_s19 = int_to_ptr.hbm [resolvable:$true] %s78_s19 }
   0x9   :  { %s51_s0 = sshll.u32 %s3453_s29, 4  ;;  %s3454_s16 = smov 128   ;;  %s52_s0 = int_to_ptr.vmem [resolvable:$true] %s51_s0 }
   0xa   :  { %s3455_s1 = smov 8   ;;  %s3456_s20 = smov [#allocation8]  }
   0xb   :  { %57 = dma.hbm_to_vmem [thread:$0]  %s50_s28, 12544, %s52_s0, [#allocation6], %s3454_s16, %s3454_s16, %s3455_s1  }
   0xc   :  { %s80_s21 = sshll.u32 %s3456_s20, 4  ;;  %s104_s23 = sshll.u32 %s4493_s9, 4  ;;  %s81_s21 = int_to_ptr.vmem [resolvable:$true] %s80_s21  ;;  %s105_s23 = int_to_ptr.hbm [resolvable:$true] %s104_s23 }
   0xd   :  { %83 = dma.hbm_to_vmem [thread:$0]  %s79_s19, 16, %s81_s21, [#allocation9]  }
   0xe   :  { %s130_s6 = sshll.u32 %s4496_s12, 4  ;;  %s3457_s26 = smov [#allocation11]   ;;  %s131_s6 = int_to_ptr.hbm [resolvable:$true] %s130_s6 }
   0xf   :  { %s106_s27 = sshll.u32 %s3457_s26, 4  ;;  %s3458_s28 = smov [#allocation14]   ;;  %s107_s27 = int_to_ptr.vmem [resolvable:$true] %s106_s27 }
  0x10   :  { %109 = dma.hbm_to_vmem [thread:$0]  %s105_s23, 16, %s107_s27, [#allocation12]  }
  0x11   :  { %s132_s29 = sshll.u32 %s3458_s28, 4  ;;  %s39_s18 = sshll.u32 %s4486_s2, 4  ;;  %s133_s29 = int_to_ptr.vmem [resolvable:$true] %s132_s29  ;;  %s40_s18 = int_to_ptr.hbm [resolvable:$true] %s39_s18 }
  0x12   :  { %135 = dma.hbm_to_vmem [thread:$0]  %s131_s6, 16, %s133_s29, [#allocation15]  }
  0x13   :  { %s62_s20 = sshll.u32 %s4488_s4, 4  ;;  %s3459_s21 = smov [#allocation3]   ;;  %s63_s20 = int_to_ptr.hbm [resolvable:$true] %s62_s20 }
  0x14   :  { %s41_s12 = sshll.u32 %s3459_s21, 4  ;;  %s3460_s22 = smov [#allocation7]   ;;  %s42_s12 = int_to_ptr.vmem [resolvable:$true] %s41_s12 }
  0x15   :  { %44 = dma.hbm_to_vmem [thread:$0]  %s40_s18, 112, %s42_s12, [#allocation4]  }
  0x16   :  { %s64_s3 = sshll.u32 %s3460_s22, 4  ;;  %s3461_s23 = smov 896   ;;  %s65_s3 = int_to_ptr.vmem [resolvable:$true] %s64_s3 }
  0x17   :  { %s3462_s24 = smov 56   ;;  %s88_s26 = sshll.u32 %s4491_s7, 4  ;;  %s89_s26 = int_to_ptr.hbm [resolvable:$true] %s88_s26 }
  0x18   :  { %70 = dma.hbm_to_vmem [thread:$0]  %s63_s20, 1792, %s65_s3, [#allocation6], %s3461_s23, %s3461_s23, %s3462_s24  }
  0x19   :  { %s3463_s6 = smov [#allocation10]   ;;  %s114_s29 = sshll.u32 %s4494_s10, 4  ;;  %s115_s29 = int_to_ptr.hbm [resolvable:$true] %s114_s29 }
  0x1a   :  { %s90_s27 = sshll.u32 %s3463_s6, 4  ;;  %s3464_s0 = smov [#allocation13]   ;;  %s91_s27 = int_to_ptr.vmem [resolvable:$true] %s90_s27 }
  0x1b   :  { %96 = dma.hbm_to_vmem [thread:$0]  %s89_s26, 2048, %s91_s27, [#allocation9], %s3454_s16, %s3454_s16, %s3455_s1  }
  0x1c   :  { %s116_s30 = sshll.u32 %s3464_s0, 4  ;;  %s141_s19 = sshll.u32 %s4497_s13, 4  ;;  %s117_s30 = int_to_ptr.vmem [resolvable:$true] %s116_s30  ;;  %s142_s19 = int_to_ptr.hbm [resolvable:$true] %s141_s19 }
  0x1d   :  { %122 = dma.hbm_to_vmem [thread:$0]  %s115_s29, 1792, %s117_s30, [#allocation12], %s3454_s16, %s3454_s16, %s3455_s1  }
  0x1e   :  { %s151_s10 = sshll.u32 %s4498_s14, 4  ;;  %s3465_s21 = smov [#allocation16]   ;;  %s152_s10 = int_to_ptr.hbm [resolvable:$true] %s151_s10 }
  0x1f   :  { %s143_s12 = sshll.u32 %s3465_s21, 4  ;;  %s3466_s22 = smov [#allocation17]   ;;  %s144_s12 = int_to_ptr.vmem [resolvable:$true] %s143_s12 }
  0x20   :  { %146 = dma.hbm_to_vmem [thread:$0]  %s142_s19, 16, %s144_s12, [#allocation15]  }
  0x21   :  { %s153_s3 = sshll.u32 %s3466_s22, 4  ;;  %s154_s3 = int_to_ptr.vmem [resolvable:$true] %s153_s3 }
  0x22   :  { %159 = dma.hbm_to_vmem [thread:$0]  %s152_s10, 2048, %s154_s3, [#allocation18], %s3454_s16, %s3454_s16, %s3455_s1  }
  0x23   :  { %3441 = dma.done.wait [#allocation4], 112  }
  0x24   :  { %3442 = vsyncadd [#allocation4], 4294967184 }
  0x25   :  { %3443 = dma.done.wait [#allocation6], 14336  }
  0x26   :  { %3444 = vsyncadd [#allocation6], 4294952960 }
  0x27   :  { %3445 = dma.done.wait [#allocation9], 2064  }
  0x28   :  { %3446 = vsyncadd [#allocation9], 4294965232 }
  0x29   :  { %3447 = dma.done.wait [#allocation12], 1808  }
  0x2a   :  { %3448 = vsyncadd [#allocation12], 4294965488 }
  0x2b   :  { %3449 = dma.done.wait [#allocation15], 32  }
  0x2c   :  { %3450 = vsyncadd [#allocation15], 4294967264 }
  0x2d   :  { %3451 = dma.done.wait [#allocation18], 2048  }
  0x2e   :  { %3452 = vsyncadd [#allocation18], 4294965248  ;;  %s4553_s23 = sld [smem:[#allocation74_spill]]  ;;  %vm311_vm0 = vcmask 261120   ;;  %v3694_v41 = vld [vmem:[#allocation5 + $0x78] sm:$0xff]  ;;  %v3706_v44 = vld [vmem:[#allocation5 + $0x70] sm:$0xff] }
  0x2f   :  { %s4554_s14 = sld [smem:[#allocation73_spill]]  ;;  %v3709_v46 = vld [vmem:[#allocation5 + $0x1f8] sm:$0xff]  ;;  %v3711_v47 = vld [vmem:[#allocation5 + $0x68] sm:$0xff]  ;;  %v3714_v49 = vld [vmem:[#allocation5 + $0x1f0] sm:$0xff]  ;;  %vm406_vm1 = vcmask 1041408   ;;  %vm449_vm2 = vcmask 123904  }
  0x30   :  { %v3717_v50 = vld [vmem:[#allocation5 + $0x60] sm:$0xff]  ;;  %v3720_v51 = vld [vmem:[#allocation5 + $0x1e8] sm:$0xff]  ;;  %v3723_v52 = vld [vmem:[#allocation5 + $0x58] sm:$0xff]  ;;  %vm611_vm3 = vcmask 130048   ;;  %s3468_s4 = smov 48   ;;  %s3469_s28 = smov 64  }
  0x31   :  { %v3726_v53 = vld [vmem:[#allocation5 + $0x1e0] sm:$0xff]  ;;  %v3731_v54 = vld [vmem:[#allocation5 + $0x50] sm:$0xff]  ;;  %v3734_v55 = vld [vmem:[#allocation5 + $0x1d8] sm:$0xff]  ;;  %s3470_s29 = smov 32   ;;  %s3471_s0 = smov 96   ;;  %vm1280_vm7 = vcmask 392192  }
  0x32   :  { %v3737_v56 = vld [vmem:[#allocation5 + $0x48] sm:$0xff]  ;;  %v3740_v57 = vld [vmem:[#allocation5 + $0x1d0] sm:$0xff]  ;;  %v3742_v58 = vld [vmem:[#allocation5 + $0x178] sm:$0xff]  ;;  %s3472_s30 = smov 80   ;;  %vm1288_vm8 = vcmask 523264   ;;  %vm1312_vm9 = vcmask 1043456  }
  0x33   :  { %v3745_v59 = vld [vmem:[#allocation5 + $0x40] sm:$0xff]  ;;  %v3748_v60 = vld [vmem:[#allocation5 + $0x170] sm:$0xff]  ;;  %v3750_v61 = vld [vmem:[#allocation5 + $0xf8] sm:$0xff]  ;;  %vm1298_vm10 = vcmask 654336   ;;  %vm1308_vm11 = vcmask 785408   ;;  %vm1314_vm12 = vcmask 1045504  }
  0x34   :  { %v2640_v1 = vld [vmem:[%s4553_s23 + $0x38] sm:$0xf]  ;;  %v3067_v2 = vld [vmem:[%s4553_s23 + $0x50] sm:$0xf0]  ;;  %v2648_v3 = vld [vmem:[%s4553_s23 + $0x40] sm:$0xf] }
  0x35   :  { %v2641_v4 = vor.u32 %v3067_v2, %v2640_v1  ;;  %v3068_v5 = vld [vmem:[%s4553_s23 + $0x58] sm:$0xf0]  ;;  %v3065_v6 = vld [vmem:[%s4553_s23 + $0x44] sm:$0xf]  ;;  %v2650_v7 = vld [vmem:[%s4553_s23 + $0x5c] sm:$0xf0] }
  0x36   :  { %v2649_v8 = vor.u32 %v3068_v5, %v2648_v3  ;;  %v2653_v9 = vor.u32 %v3065_v6, %v2650_v7  ;;  %v2612_v10 = vld [vmem:[%s4553_s23] sm:$0xf]  ;;  %v3060_v11 = vld [vmem:[%s4553_s23 + $0x18] sm:$0xf0]  ;;  %v2620_v12 = vld [vmem:[%s4553_s23 + $0x8] sm:$0xf] }
  0x37   :  { %321 = vmatpush.bf16.msra.mxu0 %v2641_v4  ;;  %v2613_v13 = vor.u32 %v3060_v11, %v2612_v10  ;;  %v3061_v14 = vld [vmem:[%s4553_s23 + $0x20] sm:$0xf0]  ;;  %v3058_v15 = vld [vmem:[%s4553_s23 + $0xc] sm:$0xf]  ;;  %v2622_v16 = vld [vmem:[%s4553_s23 + $0x24] sm:$0xf0] }
  0x38   :  { %347 = vmatpush.bf16.msra.mxu2 %v2649_v8  ;;  %360 = vmatpush.bf16.msra.mxu3 %v2653_v9  ;;  %v2621_v17 = vor.u32 %v3061_v14, %v2620_v12  ;;  %v2625_v18 = vor.u32 %v3058_v15, %v2622_v16  ;;  %v205_v19 = vld [vmem:[%s4554_s14] sm:$0x3]  ;;  %v3064_v20 = vld [vmem:[%s4553_s23 + $0x3c] sm:$0xf]  ;;  %v2642_v21 = vld [vmem:[%s4553_s23 + $0x54] sm:$0xf0] }
  0x39   :  { %v2645_v22 = vor.u32 %v3064_v20, %v2642_v21  ;;  %v3057_v23 = vld [vmem:[%s4553_s23 + $0x4] sm:$0xf]  ;;  %v2614_v24 = vld [vmem:[%s4553_s23 + $0x1c] sm:$0xf0]  ;;  %v2664_v25 = vld [vmem:[%s4553_s23 + $0x50] sm:$0xf]  ;;  %v3663_v26 = vpack.c.bf16 %v205_v19, %v205_v19 }
  0x3a   :  { %v3070_v27 = vld [vmem:[%s4553_s23 + $0x68] sm:$0xf0]  ;;  %v2636_v28 = vld [vmem:[%s4553_s23 + $0x18] sm:$0xf]  ;;  %v3063_v29 = vld [vmem:[%s4553_s23 + $0x30] sm:$0xf0]  ;;  %v2617_v35 = vor.u32 %v3057_v23, %v2614_v24 }
  0x3b   :  { %322 = vmatpush.bf16.msra.mxu0 %v2613_v13  ;;  %v2665_v30 = vor.u32 %v3070_v27, %v2664_v25  ;;  %v2656_v31 = vld [vmem:[%s4553_s23 + $0x48] sm:$0xf]  ;;  %v3069_v32 = vld [vmem:[%s4553_s23 + $0x60] sm:$0xf0]  ;;  %v3066_v33 = vld [vmem:[%s4553_s23 + $0x4c] sm:$0xf]  ;;  %v2637_v36 = vor.u32 %v3063_v29, %v2636_v28 }
  0x3c   :  { %348 = vmatpush.bf16.msra.mxu2 %v2621_v17  ;;  %361 = vmatpush.bf16.msra.mxu3 %v2625_v18  ;;  %v2658_v34 = vld [vmem:[%s4553_s23 + $0x64] sm:$0xf0]  ;;  %v2657_v38 = vor.u32 %v3069_v32, %v2656_v31  ;;  %v3059_v39 = vld [vmem:[%s4553_s23 + $0x14] sm:$0xf]  ;;  %v2630_v40 = vld [vmem:[%s4553_s23 + $0x2c] sm:$0xf0] }
  0x3d   :  { %v2661_v37 = vor.u32 %v3066_v33, %v2658_v34  ;;  %v2628_v42 = vld [vmem:[%s4553_s23 + $0x10] sm:$0xf]  ;;  %v3062_v43 = vld [vmem:[%s4553_s23 + $0x28] sm:$0xf0]  ;;  %v2633_v45 = vor.u32 %v3059_v39, %v2630_v40  ;;  %v3754_v62 = vld [vmem:[#allocation5 + $0x38] sm:$0xff]  ;;  %vm1375_vm13 = vcmask 916480  }
  0x3e   :  { %2666 = vmatmul.msk.bf16.vlgmr.msra.gmra.mxu0 %vm311_vm0, %v3663_v26  ;;  %v2629_v48 = vor.u32 %v3062_v43, %v2628_v42  ;;  %v3756_v63 = vld [vmem:[#allocation5 + $0x1c8] sm:$0xff]  ;;  %v3761_v0 = vld [vmem:[#allocation5 + $0xf0] sm:$0xff]  ;;  %v3771_v3 = vld [vmem:[#allocation5 + $0x1c0] sm:$0xff]  ;;  %vm1473_vm14 = vcmask 113664   ;;  %vm1823_vm15 = vcmask 912384  }
  0x3f   :  { %334 = vmatpush.bf16.msrb.mxu0 %v2645_v22  ;;  %2668 = vmatmul.msk.bf16.vlgmr.msra.gmra.mxu2 %vm311_vm0, %v3663_v26  ;;  %4555 = vst [vmem:[#allocation25_spill] sm:$0xff] %v3756_v63  ;;  %v3764_v1 = vld [vmem:[#allocation5 + $0x168] sm:$0xff]  ;;  %v3769_v2 = vld [vmem:[#allocation5 + $0x30] sm:$0xff]  ;;  %v3777_v5 = vld [vmem:[#allocation5 + $0x160] sm:$0xff] }
  0x40   :  { %399 = vmatpush.bf16.msrb.mxu2 %v2665_v30  ;;  %2669 = vmatmul.msk.bf16.vlgmr.msra.gmra.mxu3 %vm311_vm0, %v3663_v26  ;;  %4556 = vst [vmem:[#allocation26_spill] sm:$0xff] %v3771_v3  ;;  %v3773_v4 = vld [vmem:[#allocation5 + $0xe8] sm:$0xff]  ;;  %v3782_v7 = vld [vmem:[#allocation5 + $0x1b8] sm:$0xff]  ;;  %v3785_v8 = vld [vmem:[#allocation5 + $0xe0] sm:$0xff] }
  0x41   :  { %386 = vmatpush.bf16.msra.mxu1 %v2661_v37  ;;  %615 = vmatpush.msrb.mxu3 %v3694_v41  ;;  %v3780_v6 = vld [vmem:[#allocation5 + $0x28] sm:$0xff]  ;;  %4557 = vst [vmem:[#allocation27_spill] sm:$0xff] %v3782_v7  ;;  %v3789_v9 = vld [vmem:[#allocation5 + $0x158] sm:$0xff]  ;;  %v3792_v10 = vld [vmem:[#allocation5 + $0x20] sm:$0xff] }
  0x42   :  { %v3794_v11 = vld [vmem:[#allocation5 + $0x1b0] sm:$0xff]  ;;  %v3797_v12 = vld [vmem:[#allocation5 + $0xd8] sm:$0xff]  ;;  %v3806_v15 = vld [vmem:[#allocation5 + $0x1a8] sm:$0xff] }
  0x43   :  { %335 = vmatpush.bf16.msrb.mxu0 %v2617_v35  ;;  %616 = vmatpush.msrb.mxu3 %v3706_v44  ;;  %4558 = vst [vmem:[#allocation28_spill] sm:$0xff] %v3794_v11  ;;  %v3801_v13 = vld [vmem:[#allocation5 + $0x150] sm:$0xff]  ;;  %v3804_v14 = vld [vmem:[#allocation5 + $0x18] sm:$0xff]  ;;  %v3814_v18 = vld [vmem:[#allocation5 + $0x1a0] sm:$0xff] }
  0x44   :  { %400 = vmatpush.bf16.msrb.mxu2 %v2637_v36  ;;  %4559 = vst [vmem:[#allocation29_spill] sm:$0xff] %v3806_v15  ;;  %v3809_v16 = vld [vmem:[#allocation5 + $0xd0] sm:$0xff]  ;;  %v3817_v19 = vld [vmem:[#allocation5 + $0xc8] sm:$0xff]  ;;  %v3822_v21 = vld [vmem:[#allocation5 + $0x198] sm:$0xff] }
  0x45   :  { %387 = vmatpush.bf16.msra.mxu1 %v2633_v45  ;;  %617 = vmatpush.msrb.mxu3 %v3711_v47  ;;  %v515_v17 = vld [vmem:[#allocation5 + $0x10] sm:$0xff]  ;;  %4560 = vst [vmem:[#allocation30_spill] sm:$0xff] %v3814_v18  ;;  %v514_v20 = vld [vmem:[#allocation5 + $0x8] sm:$0xff]  ;;  %v3824_v22 = vld [vmem:[#allocation5 + $0xc0] sm:$0xff] }
  0x46   :  { %4561 = vst [vmem:[#allocation31_spill] sm:$0xff] %v3822_v21  ;;  %v513_v23 = vld [vmem:[#allocation5] sm:$0xff]  ;;  %v3828_v24 = vld [vmem:[#allocation5 + $0xb8] sm:$0xff]  ;;  %v3831_v25 = vld [vmem:[#allocation5 + $0x190] sm:$0xff] }
  0x47   :  { %373 = vmatpush.bf16.msra.mxu0 %v2657_v38  ;;  %618 = vmatpush.msrb.mxu3 %v3717_v50  ;;  %4562 = vst [vmem:[#allocation32_spill] sm:$0xff] %v3831_v25  ;;  %v3834_v27 = vld [vmem:[#allocation5 + $0x278] sm:$0xff]  ;;  %v3838_v28 = vld [vmem:[#allocation5 + $0xb0] sm:$0xff]  ;;  %v3840_v29 = vld [vmem:[#allocation5 + $0x188] sm:$0xff] }
  0x48   :  { %675 = vmatpush.msra.mxu2 %v3709_v46  ;;  %2671 = vmatmul.msk.bf16.vlgmr.msra.gmra.mxu1 %vm311_vm0, %v3663_v26  ;;  %4563 = vst [vmem:[#allocation33_spill] sm:$0xff] %v3840_v29  ;;  %v3844_v30 = vld [vmem:[#allocation5 + $0x270] sm:$0xff]  ;;  %v3846_v31 = vld [vmem:[#allocation5 + $0xa8] sm:$0xff]  ;;  %v3849_v32 = vld [vmem:[#allocation5 + $0x180] sm:$0xff] }
  0x49   :  { %619 = vmatpush.msrb.mxu3 %v3723_v52  ;;  %655 = vmatpush.msrb.mxu1 %v3742_v58  ;;  %4564 = vst [vmem:[#allocation34_spill] sm:$0xff] %v3846_v31  ;;  %v3855_v33 = vld [vmem:[#allocation5 + $0xa0] sm:$0xff]  ;;  %v3860_v34 = vld [vmem:[#allocation5 + $0x98] sm:$0xff]  ;;  %v3865_v35 = vld [vmem:[#allocation5 + $0x90] sm:$0xff] }
  0x4a   :  { %676 = vmatpush.msra.mxu2 %v3714_v49  ;;  %4565 = vst [vmem:[#allocation35_spill] sm:$0xff] %v3849_v32  ;;  %v3869_v36 = vld [vmem:[#allocation5 + $0x88] sm:$0xff]  ;;  %v3884_v37 = vld [vmem:[#allocation5 + $0x80] sm:$0xff]  ;;  %v3892_v40 = vld [vmem:[#allocation5 + $0x2f8] sm:$0xff] }
  0x4b   :  { %374 = vmatpush.bf16.msra.mxu0 %v2629_v48  ;;  %620 = vmatpush.msrb.mxu3 %v3731_v54  ;;  %4566 = vst [vmem:[#allocation36_spill] sm:$0xff] %v3855_v33  ;;  %v3886_v38 = vld [vmem:[#allocation5 + $0x148] sm:$0xff]  ;;  %v3888_v39 = vld [vmem:[#allocation5 + $0x260] sm:$0xff]  ;;  %v3898_v42 = vld [vmem:[#allocation5 + $0x258] sm:$0xff] }
  0x4c   :  { %677 = vmatpush.msra.mxu2 %v3720_v51  ;;  %656 = vmatpush.msrb.mxu1 %v3748_v60  ;;  %4567 = vst [vmem:[#allocation37_spill] sm:$0xff] %v3860_v34  ;;  %v3901_v43 = vld [vmem:[#allocation5 + $0x2f0] sm:$0xff] }
  0x4d   :  { %621 = vmatpush.msrb.mxu3 %v3737_v56  ;;  %4568 = vst [vmem:[#allocation38_spill] sm:$0xff] %v3865_v35  ;;  %v3907_v45 = vld [vmem:[#allocation5 + $0x250] sm:$0xff] }
  0x4e   :  { %678 = vmatpush.msra.mxu2 %v3726_v53  ;;  %2667 = vmatmul.msk.bf16.vlgmr.msrb.gmra.mxu0 %vm311_vm0, %v3663_v26  ;;  %4569 = vst [vmem:[#allocation39_spill] sm:$0xff] %v3869_v36  ;;  %v3914_v48 = vld [vmem:[#allocation5 + $0x130] sm:$0xff] }
  0x4f   :  { %622 = vmatpush.msrb.mxu3 %v3745_v59  ;;  %2672 = vmatmul.msk.bf16.vlgmr.msrb.gmra.mxu2 %vm311_vm0, %v3663_v26  ;;  %4570 = vst [vmem:[#allocation40_spill] sm:$0xff] %v3884_v37 }
  0x50   :  { %679 = vmatpush.msra.mxu2 %v3734_v55  ;;  %635 = vmatpush.msrb.mxu0 %v3750_v61  ;;  %4571 = vst [vmem:[#allocation41_spill] sm:$0xff] %v3892_v40 }
  0x51   :  { %623 = vmatpush.msrb.mxu3 %v3754_v62  ;;  %657 = vmatpush.msrb.mxu1 %v3764_v1  ;;  %4572 = vst [vmem:[#allocation42_spill] sm:$0xff] %v3901_v43 }
  0x52   :  { %680 = vmatpush.msra.mxu2 %v3740_v57  ;;  %636 = vmatpush.msrb.mxu0 %v3761_v0 }
  0x53   :  { %624 = vmatpush.msrb.mxu3 %v3769_v2  ;;  %658 = vmatpush.msrb.mxu1 %v3777_v5 }
  0x54   :  { %681 = vmatpush.msra.mxu2 %v3756_v63  ;;  %637 = vmatpush.msrb.mxu0 %v3773_v4 }
  0x55   :  { %625 = vmatpush.msrb.mxu3 %v3780_v6  ;;  %659 = vmatpush.msrb.mxu1 %v3789_v9 }
  0x56   :  { %682 = vmatpush.msra.mxu2 %v3771_v3  ;;  %638 = vmatpush.msrb.mxu0 %v3785_v8 }
  0x57   :  { %626 = vmatpush.msrb.mxu3 %v3792_v10  ;;  %660 = vmatpush.msrb.mxu1 %v3801_v13 }
  0x58   :  { %683 = vmatpush.msra.mxu2 %v3782_v7  ;;  %639 = vmatpush.msrb.mxu0 %v3797_v12 }
  0x59   :  { %627 = vmatpush.msrb.mxu3 %v3804_v14  ;;  %661 = vmatpush.msrb.mxu1 %v3886_v38 }
  0x5a   :  { %684 = vmatpush.msra.mxu2 %v3794_v11  ;;  %640 = vmatpush.msrb.mxu0 %v3809_v16 }
  0x5b   :  { %628 = vmatpush.msrb.mxu3 %v515_v17 }
  0x5c   :  { %685 = vmatpush.msra.mxu2 %v3806_v15  ;;  %641 = vmatpush.msrb.mxu0 %v3817_v19 }
  0x5d   :  { %629 = vmatpush.msrb.mxu3 %v514_v20 }
  0x5e   :  { %686 = vmatpush.msra.mxu2 %v3814_v18  ;;  %642 = vmatpush.msrb.mxu0 %v3824_v22 }
  0x5f   :  { %2670 = vmatmul.msk.bf16.vlgmr.msra.gmra.mxu0 %vm311_vm0, %v3663_v26  ;;  %630 = vmatpush.msrb.mxu3 %v513_v23  ;;  %v3853_v26 = vld [vmem:[#allocation5 + $0x268] sm:$0xff] }
  0x60   :  { %687 = vmatpush.msra.mxu2 %v3822_v21  ;;  %643 = vmatpush.msrb.mxu0 %v3828_v24  ;;  %v3982_v21 = vld [vmem:[#allocation5 + $0x2a8] sm:$0xff] }
  0x61   :  { %695 = vmatpush.msra.mxu3 %v3834_v27  ;;  %4593 = vst [vmem:[#allocation63_spill] sm:$0xff] %v3982_v21 }
  0x62   :  { %688 = vmatpush.msra.mxu2 %v3831_v25  ;;  %644 = vmatpush.msrb.mxu0 %v3838_v28  ;;  %v3973_v25 = vld [vmem:[#allocation5 + $0x2b0] sm:$0xff] }
  0x63   :  { %696 = vmatpush.msra.mxu3 %v3844_v30  ;;  %4590 = vst [vmem:[#allocation60_spill] sm:$0xff] %v3973_v25 }
  0x64   :  { %689 = vmatpush.msra.mxu2 %v3840_v29  ;;  %645 = vmatpush.msrb.mxu0 %v3846_v31  ;;  %v3964_v29 = vld [vmem:[#allocation5 + $0x2b8] sm:$0xff] }
  0x65   :  { %697 = vmatpush.msra.mxu3 %v3853_v26  ;;  %4587 = vst [vmem:[#allocation57_spill] sm:$0xff] %v3964_v29 }
  0x66   :  { %690 = vmatpush.msra.mxu2 %v3849_v32  ;;  %646 = vmatpush.msrb.mxu0 %v3855_v33  ;;  %v3955_v32 = vld [vmem:[#allocation5 + $0x2c0] sm:$0xff] }
  0x67   :  { %698 = vmatpush.msra.mxu3 %v3888_v39  ;;  %4584 = vst [vmem:[#allocation54_spill] sm:$0xff] %v3955_v32 }
  0x68   :  { %759 = vmatpush.msrb.mxu2 %v3694_v41  ;;  %647 = vmatpush.msrb.mxu0 %v3860_v34  ;;  %v3896_v41 = vld [vmem:[#allocation5 + $0x140] sm:$0xff] }
  0x69   :  { %662 = vmatpush.msrb.mxu1 %v3896_v41  ;;  %699 = vmatpush.msra.mxu3 %v3898_v42 }
  0x6a   :  { %760 = vmatpush.msrb.mxu2 %v3706_v44  ;;  %648 = vmatpush.msrb.mxu0 %v3865_v35  ;;  %v3905_v44 = vld [vmem:[#allocation5 + $0x138] sm:$0xff] }
  0x6b   :  { %663 = vmatpush.msrb.mxu1 %v3905_v44  ;;  %700 = vmatpush.msra.mxu3 %v3907_v45 }
  0x6c   :  { %761 = vmatpush.msrb.mxu2 %v3711_v47  ;;  %649 = vmatpush.msrb.mxu0 %v3869_v36  ;;  %v3910_v47 = vld [vmem:[#allocation5 + $0x2e8] sm:$0xff] }
  0x6d   :  { %4573 = vst [vmem:[#allocation43_spill] sm:$0xff] %v3910_v47  ;;  %664 = vmatpush.msrb.mxu1 %v3914_v48 }
  0x6e   :  { %762 = vmatpush.msrb.mxu2 %v3717_v50  ;;  %650 = vmatpush.msrb.mxu0 %v3884_v37  ;;  %v3916_v50 = vld [vmem:[#allocation5 + $0x248] sm:$0xff] }
  0x6f   :  { %701 = vmatpush.msra.mxu3 %v3916_v50 }
  0x70   :  { %763 = vmatpush.msrb.mxu2 %v3723_v52  ;;  %715 = vmatpush.msra.mxu0 %v3892_v40  ;;  %v3919_v52 = vld [vmem:[#allocation5 + $0x2e0] sm:$0xff] }
  0x71   :  { %4574 = vst [vmem:[#allocation44_spill] sm:$0xff] %v3919_v52  ;;  %v4010_v40 = vld [vmem:[#allocation5 + $0x280] sm:$0xff] }
  0x72   :  { %764 = vmatpush.msrb.mxu2 %v3731_v54  ;;  %716 = vmatpush.msra.mxu0 %v3901_v43  ;;  %v3923_v54 = vld [vmem:[#allocation5 + $0x128] sm:$0xff]  ;;  %4601 = vst [vmem:[#allocation71_spill] sm:$0xff] %v4010_v40 }
  0x73   :  { %665 = vmatpush.msrb.mxu1 %v3923_v54  ;;  %v3988_v43 = vld [vmem:[#allocation5 + $0x208] sm:$0xff] }
  0x74   :  { %765 = vmatpush.msrb.mxu2 %v3737_v56  ;;  %717 = vmatpush.msra.mxu0 %v3910_v47  ;;  %v3925_v56 = vld [vmem:[#allocation5 + $0x240] sm:$0xff]  ;;  %v3979_v47 = vld [vmem:[#allocation5 + $0x210] sm:$0xff]  ;;  %4595 = vst [vmem:[#allocation65_spill] sm:$0xff] %v3988_v43 }
  0x75   :  { %702 = vmatpush.msra.mxu3 %v3925_v56  ;;  %4592 = vst [vmem:[#allocation62_spill] sm:$0xff] %v3979_v47 }
  0x76   :  { %766 = vmatpush.msrb.mxu2 %v3745_v59  ;;  %718 = vmatpush.msra.mxu0 %v3919_v52  ;;  %v3928_v59 = vld [vmem:[#allocation5 + $0x2d8] sm:$0xff] }
  0x77   :  { %4575 = vst [vmem:[#allocation45_spill] sm:$0xff] %v3928_v59  ;;  %v3970_v52 = vld [vmem:[#allocation5 + $0x218] sm:$0xff] }
  0x78   :  { %767 = vmatpush.msrb.mxu2 %v3754_v62  ;;  %719 = vmatpush.msra.mxu0 %v3928_v59  ;;  %v3932_v62 = vld [vmem:[#allocation5 + $0x120] sm:$0xff]  ;;  %4589 = vst [vmem:[#allocation59_spill] sm:$0xff] %v3970_v52 }
  0x79   :  { %4576 = vst [vmem:[#allocation46_spill] sm:$0xff] %v3932_v62  ;;  %666 = vmatpush.msrb.mxu1 %v3932_v62  ;;  %v3961_v59 = vld [vmem:[#allocation5 + $0x220] sm:$0xff] }
  0x7a   :  { %768 = vmatpush.msrb.mxu2 %v3769_v2  ;;  %v3934_v2 = vld [vmem:[#allocation5 + $0x238] sm:$0xff]  ;;  %4586 = vst [vmem:[#allocation56_spill] sm:$0xff] %v3961_v59 }
  0x7b   :  { %4577 = vst [vmem:[#allocation47_spill] sm:$0xff] %v3934_v2  ;;  %703 = vmatpush.msra.mxu3 %v3934_v2 }
  0x7c   :  { %769 = vmatpush.msrb.mxu2 %v3780_v6  ;;  %v3937_v6 = vld [vmem:[#allocation5 + $0x2d0] sm:$0xff] }
  0x7d   :  { %4578 = vst [vmem:[#allocation48_spill] sm:$0xff] %v3937_v6  ;;  %720 = vmatpush.msra.mxu0 %v3937_v6  ;;  %v3959_v6 = vld [vmem:[#allocation5 + $0x108] sm:$0xff] }
  0x7e   :  { %770 = vmatpush.msrb.mxu2 %v3792_v10  ;;  %v3941_v10 = vld [vmem:[#allocation5 + $0x118] sm:$0xff]  ;;  %4585 = vst [vmem:[#allocation55_spill] sm:$0xff] %v3959_v6 }
  0x7f   :  { %4579 = vst [vmem:[#allocation49_spill] sm:$0xff] %v3941_v10  ;;  %667 = vmatpush.msrb.mxu1 %v3941_v10 }
  0x80   :  { %771 = vmatpush.msrb.mxu2 %v3804_v14  ;;  %v3943_v14 = vld [vmem:[#allocation5 + $0x230] sm:$0xff] }
  0x81   :  { %4580 = vst [vmem:[#allocation50_spill] sm:$0xff] %v3943_v14  ;;  %704 = vmatpush.msra.mxu3 %v3943_v14 }
  0x82   :  { %772 = vmatpush.msrb.mxu2 %v515_v17  ;;  %v3946_v17 = vld [vmem:[#allocation5 + $0x2c8] sm:$0xff] }
  0x83   :  { %4581 = vst [vmem:[#allocation51_spill] sm:$0xff] %v3946_v17  ;;  %721 = vmatpush.msra.mxu0 %v3946_v17  ;;  %v3968_v17 = vld [vmem:[#allocation5 + $0x100] sm:$0xff] }
  0x84   :  { %773 = vmatpush.msrb.mxu2 %v514_v20  ;;  %v3950_v20 = vld [vmem:[#allocation5 + $0x110] sm:$0xff]  ;;  %4588 = vst [vmem:[#allocation58_spill] sm:$0xff] %v3968_v17 }
  0x85   :  { %4582 = vst [vmem:[#allocation52_spill] sm:$0xff] %v3950_v20  ;;  %668 = vmatpush.msrb.mxu1 %v3950_v20  ;;  %722 = vmatpush.msra.mxu0 %v3955_v32  ;;  %v3975_v32 = vld [vmem:[#allocation5 + $0x308] sm:$0xff] }
  0x86   :  { %774 = vmatpush.msrb.mxu2 %v513_v23  ;;  %v3952_v23 = vld [vmem:[#allocation5 + $0x228] sm:$0xff]  ;;  %4591 = vst [vmem:[#allocation61_spill] sm:$0xff] %v3975_v32 }
  0x87   :  { %4583 = vst [vmem:[#allocation53_spill] sm:$0xff] %v3952_v23  ;;  %705 = vmatpush.msra.mxu3 %v3952_v23  ;;  %669 = vmatpush.msrb.mxu1 %v3959_v6 }
  0x88   :  { %723 = vmatpush.msra.mxu0 %v3964_v29  ;;  %v3984_v29 = vld [vmem:[#allocation5 + $0x300] sm:$0xff] }
  0x89   :  { %706 = vmatpush.msra.mxu3 %v3961_v59  ;;  %670 = vmatpush.msrb.mxu1 %v3968_v17  ;;  %4594 = vst [vmem:[#allocation64_spill] sm:$0xff] %v3984_v29  ;;  %v3992_v17 = vld [vmem:[#allocation5 + $0x2a0] sm:$0xff] }
  0x8a   :  { %724 = vmatpush.msra.mxu0 %v3973_v25  ;;  %4596 = vst [vmem:[#allocation66_spill] sm:$0xff] %v3992_v17  ;;  %v3995_v25 = vld [vmem:[#allocation5 + $0x200] sm:$0xff] }
  0x8b   :  { %707 = vmatpush.msra.mxu3 %v3970_v52  ;;  %749 = vmatpush.msra.mxu1 %v3975_v32  ;;  %4597 = vst [vmem:[#allocation67_spill] sm:$0xff] %v3995_v25  ;;  %v3998_v32 = vld [vmem:[#allocation5 + $0x298] sm:$0xff] }
  0x8c   :  { %725 = vmatpush.msra.mxu0 %v3982_v21  ;;  %4598 = vst [vmem:[#allocation68_spill] sm:$0xff] %v3998_v32  ;;  %v4003_v21 = vld [vmem:[#allocation5 + $0x290] sm:$0xff] }
  0x8d   :  { %708 = vmatpush.msra.mxu3 %v3979_v47  ;;  %750 = vmatpush.msra.mxu1 %v3984_v29  ;;  %v4001_v47 = vld [vmem:[#allocation3] sm:$0x7f]  ;;  %4599 = vst [vmem:[#allocation69_spill] sm:$0xff] %v4003_v21 }
  0x8e   :  { %726 = vmatpush.msra.mxu0 %v3992_v17  ;;  %v225_v29 = vperm.slane %v4001_v47, 0  ;;  %v228_v52 = vperm.slane %v4001_v47, 3 }
  0x8f   :  { %709 = vmatpush.msra.mxu3 %v3988_v43  ;;  %v4007_v43 = vld [vmem:[#allocation5 + $0x288] sm:$0xff] }
  0x90   :  { %727 = vmatpush.msra.mxu0 %v3998_v32  ;;  %4600 = vst [vmem:[#allocation70_spill] sm:$0xff] %v4007_v43 }
  0x91   :  { %710 = vmatpush.msra.mxu3 %v3995_v25 }
  0x92   :  { %728 = vmatpush.msra.mxu0 %v4003_v21  ;;  %v227_v21 = vperm.slane %v4001_v47, 2 }
  0x94   :  { %729 = vmatpush.msra.mxu0 %v4007_v43 }
  0x96   :  { %730 = vmatpush.msra.mxu0 %v4010_v40 }
  0xbb   :  { %v324_v17 = vpop.f32.mrf.mxu0 }
  0xbc   :  { %v4012_v25 = vadd.f32 %v324_v17, %v225_v29 }
  0xbe   :  { %4602 = vst [vmem:[#allocation72_spill] sm:$0xff] %v4012_v25  ;;  %v407_v32 = vsel %vm406_vm1, %v4012_v25, 0.0  ;;  %v457_v18 = vmul.f32 %v4012_v25, %v4012_v25 }
  0xbf   :  { %v408_v37 = vrot.slane %v407_v32, 4 }
  0xc0   :  { %v464_v15 = vsel %vm406_vm1, %v457_v18, 0.0 }
  0xc1   :  { %v409_v43 = vadd.f32 %v408_v37, %v407_v32  ;;  %v465_v11 = vrot.slane %v464_v15, 4 }
  0xc2   :  { %v350_v6 = vpop.f32.mrf.mxu2 }
  0xc3   :  { %v363_v29 = vpop.f32.mrf.mxu3  ;;  %v4022_v17 = vadd.f32 %v350_v6, %v227_v21  ;;  %v326_v36 = vpop.f32.mrf.mxu0  ;;  %v410_v59 = vrot.slane %v409_v43, 2  ;;  %v466_v18 = vadd.f32 %v465_v11, %v464_v15  ;;  %v226_v21 = vperm.slane %v4001_v47, 1 }
  0xc4   :  { %v4024_v40 = vadd.f32 %v363_v29, %v228_v52 }
  0xc5   :  { %v389_v20 = vpop.f32.mrf.mxu1  ;;  %v421_v25 = vsel %vm406_vm1, %v4022_v17, 0.0  ;;  %v411_v37 = vadd.f32 %v410_v59, %v409_v43  ;;  %v467_v33 = vrot.slane %v466_v18, 2  ;;  %v231_v59 = vperm.slane %v4001_v47, 6 }
  0xc6   :  { %v428_v35 = vsel %vm406_vm1, %v4024_v40, 0.0  ;;  %v422_v23 = vrot.slane %v421_v25, 4 }
  0xc7   :  { %v429_v32 = vrot.slane %v428_v35, 4  ;;  %v412_v52 = vrot.slane %v411_v37, 1 }
  0xc8   :  { %v423_v7 = vadd.f32 %v422_v23, %v421_v25 }
  0xc9   :  { %v430_v34 = vadd.f32 %v429_v32, %v428_v35  ;;  %v413_v14 = vadd.f32 %v412_v52, %v411_v37  ;;  %v230_v35 = vperm.slane %v4001_v47, 5 }
  0xca   :  { %v352_v36 = vpop.f32.mrf.mxu2  ;;  %v424_v29 = vrot.slane %v423_v7, 2 }
  0xcb   :  { %v431_v6 = vrot.slane %v430_v34, 2  ;;  %v365_v10 = vpop.f32.mrf.mxu3  ;;  %v337_v3 = vpop.f32.mrf.mxu0  ;;  %631 = vmatmul.f32.vlgmr.msrb.gmra.mxu3 %v413_v14 }
  0xcc   :  { %v4031_v63 = vadd.f32 %v337_v3, %v226_v21  ;;  %v425_v2 = vadd.f32 %v424_v29, %v423_v7  ;;  %799 = vmatpush.msrb.mxu3 %v3742_v58  ;;  %v468_v3 = vadd.f32 %v467_v33, %v466_v18  ;;  %v229_v18 = vperm.slane %v4001_v47, 4 }
  0xcd   :  { %v432_v62 = vadd.f32 %v431_v6, %v430_v34  ;;  %v391_v31 = vpop.f32.mrf.mxu1  ;;  %v4039_v34 = vadd.f32 %v389_v20, %v230_v35 }
  0xce   :  { %v414_v11 = vsel %vm406_vm1, %v4031_v63, 0.0  ;;  %v426_v15 = vrot.slane %v425_v2, 1  ;;  %800 = vmatpush.msrb.mxu3 %v3748_v60  ;;  %v458_v33 = vmul.f32 %v4031_v63, %v4031_v63 }
  0xcf   :  { %v433_v25 = vrot.slane %v432_v62, 1  ;;  %v415_v43 = vrot.slane %v414_v11, 4 }
  0xd0   :  { %v427_v10 = vadd.f32 %v426_v15, %v425_v2  ;;  %801 = vmatpush.msrb.mxu3 %v3764_v1  ;;  %v442_v1 = vsel %vm406_vm1, %v4039_v34, 0.0 }
  0xd1   :  { %v434_v23 = vadd.f32 %v433_v25, %v432_v62  ;;  %v416_v7 = vadd.f32 %v415_v43, %v414_v11  ;;  %v469_v62 = vrot.slane %v468_v3, 1  ;;  %v443_v21 = vrot.slane %v442_v1, 4 }
  0xd2   :  { %671 = vmatmul.f32.vlgmr.msrb.gmra.mxu1 %v427_v10  ;;  %v402_v31 = vpop.f32.mrf.mxu2  ;;  %802 = vmatpush.msrb.mxu3 %v3777_v5  ;;  %v471_v5 = vsel %vm406_vm1, %v458_v33, 0.0  ;;  %v4610_v33 = vld [vmem:[#allocation49_spill] sm:$0xff] }
  0xd3   :  { %691 = vmatmul.f32.vlgmr.msra.gmra.mxu2 %v434_v23  ;;  %v417_v14 = vrot.slane %v416_v7, 2  ;;  %779 = vmatpush.msrb.mxu1 %v3750_v61  ;;  %v339_v58 = vpop.f32.mrf.mxu0  ;;  %v4042_v32 = vadd.f32 %v402_v31, %v231_v59  ;;  %v470_v37 = vadd.f32 %v469_v62, %v468_v3  ;;  %v472_v47 = vrot.slane %v471_v5, 4  ;;  %v4606_v3 = vld [vmem:[#allocation46_spill] sm:$0xff] }
  0xd4   :  { %839 = vmatpush.msra.mxu2 %v3834_v27  ;;  %v459_v27 = vmul.f32 %v4022_v17, %v4022_v17  ;;  %803 = vmatpush.msrb.mxu3 %v3789_v9 }
  0xd5   :  { %v418_v60 = vadd.f32 %v417_v14, %v416_v7  ;;  %780 = vmatpush.msrb.mxu1 %v3761_v0  ;;  %v450_v2 = vsel %vm449_vm2, %v4042_v32, 0.0  ;;  %v4607_v7 = vld [vmem:[#allocation36_spill] sm:$0xff] }
  0xd6   :  { %v451_v61 = vrot.slane %v450_v2, 4  ;;  %840 = vmatpush.msra.mxu2 %v3844_v30  ;;  %804 = vmatpush.msrb.mxu3 %v3801_v13  ;;  %v478_v6 = vsel %vm406_vm1, %v459_v27, 0.0  ;;  %v4613_v27 = vld [vmem:[#allocation53_spill] sm:$0xff] }
  0xd7   :  { %781 = vmatpush.msrb.mxu1 %v3773_v4  ;;  %v419_v20 = vrot.slane %v418_v60, 1  ;;  %v479_v13 = vrot.slane %v478_v6, 4 }
  0xd8   :  { %v452_v0 = vadd.f32 %v451_v61, %v450_v2  ;;  %841 = vmatpush.msra.mxu2 %v3853_v26  ;;  %805 = vmatpush.msrb.mxu3 %v3886_v38  ;;  %v4611_v61 = vld [vmem:[#allocation37_spill] sm:$0xff] }
  0xd9   :  { %782 = vmatpush.msrb.mxu1 %v3785_v8  ;;  %v420_v30 = vadd.f32 %v419_v20, %v418_v60  ;;  %v444_v8 = vadd.f32 %v443_v21, %v442_v1  ;;  %v480_v25 = vadd.f32 %v479_v13, %v478_v6  ;;  %v4609_v60 = vld [vmem:[#allocation26_spill] sm:$0xff]  ;;  %v4612_v1 = vld [vmem:[#allocation27_spill] sm:$0xff]  ;;  %v4616_v21 = vld [vmem:[#allocation28_spill] sm:$0xff] }
  0xda   :  { %v453_v52 = vrot.slane %v452_v0, 2  ;;  %v404_v4 = vpop.f32.mrf.mxu2  ;;  %842 = vmatpush.msra.mxu2 %v3888_v39  ;;  %806 = vmatpush.msrb.mxu3 %v3896_v41  ;;  %v473_v39 = vadd.f32 %v472_v47, %v471_v5  ;;  %v4619_v47 = vld [vmem:[#allocation55_spill] sm:$0xff] }
  0xdb   :  { %775 = vmatmul.f32.vlgmr.msrb.gmra.mxu2 %v470_v37  ;;  %783 = vmatpush.msrb.mxu1 %v3797_v12  ;;  %v4615_v37 = vld [vmem:[#allocation52_spill] sm:$0xff]  ;;  %v4621_v13 = vld [vmem:[#allocation59_spill] sm:$0xff] }
  0xdc   :  { %v376_v9 = vpop.f32.mrf.mxu0  ;;  %651 = vmatmul.f32.vlgmr.msrb.gmra.mxu0 %v420_v30  ;;  %v454_v36 = vadd.f32 %v453_v52, %v452_v0  ;;  %843 = vmatpush.msra.mxu2 %v3898_v42  ;;  %v445_v42 = vrot.slane %v444_v8, 2  ;;  %v4614_v0 = vld [vmem:[#allocation38_spill] sm:$0xff]  ;;  %v4617_v52 = vld [vmem:[#allocation56_spill] sm:$0xff] }
  0xdd   :  { %v4066_v26 = vadd.f32 %v376_v9, %v229_v18  ;;  %819 = vmatpush.msrb.mxu0 %v3709_v46  ;;  %784 = vmatpush.msrb.mxu1 %v3809_v16  ;;  %v460_v46 = vmul.f32 %v4024_v40, %v4024_v40  ;;  %v463_v16 = vmul.f32 %v4042_v32, %v4042_v32  ;;  %v4618_v9 = vld [vmem:[#allocation39_spill] sm:$0xff] }
  0xde   :  { %v455_v29 = vrot.slane %v454_v36, 1  ;;  %844 = vmatpush.msra.mxu2 %v3907_v45  ;;  %807 = vmatpush.msrb.mxu3 %v3905_v44  ;;  %v474_v45 = vrot.slane %v473_v39, 2 }
  0xdf   :  { %v435_v12 = vsel %vm406_vm1, %v4066_v26, 0.0  ;;  %v461_v11 = vmul.f32 %v4066_v26, %v4066_v26  ;;  %820 = vmatpush.msrb.mxu0 %v3714_v49  ;;  %785 = vmatpush.msrb.mxu1 %v3817_v19  ;;  %v485_v19 = vsel %vm406_vm1, %v460_v46, 0.0  ;;  %v506_v41 = vsel %vm449_vm2, %v463_v16, 0.0 }
  0xe0   :  { %v436_v38 = vrot.slane %v435_v12, 4  ;;  %v456_v35 = vadd.f32 %v455_v29, %v454_v36  ;;  %845 = vmatpush.msra.mxu2 %v3916_v50  ;;  %808 = vmatpush.msrb.mxu3 %v3914_v48  ;;  %v481_v50 = vrot.slane %v480_v25, 2  ;;  %v486_v59 = vrot.slane %v485_v19, 4  ;;  %v4604_v48 = vld [vmem:[#allocation47_spill] sm:$0xff]  ;;  %v4620_v36 = vld [vmem:[#allocation29_spill] sm:$0xff]  ;;  %v4622_v29 = vld [vmem:[#allocation40_spill] sm:$0xff] }
  0xe1   :  { %v492_v15 = vsel %vm406_vm1, %v461_v11, 0.0  ;;  %821 = vmatpush.msrb.mxu0 %v3720_v51  ;;  %786 = vmatpush.msrb.mxu1 %v3824_v22  ;;  %v507_v10 = vrot.slane %v506_v41, 4  ;;  %v4623_v11 = vld [vmem:[#allocation30_spill] sm:$0xff] }
  0xe2   :  { %v437_v49 = vadd.f32 %v436_v38, %v435_v12  ;;  %v493_v43 = vrot.slane %v492_v15, 4  ;;  %846 = vmatpush.msra.mxu2 %v3925_v56  ;;  %809 = vmatpush.msrb.mxu3 %v3923_v54  ;;  %v4605_v56 = vld [vmem:[#allocation25_spill] sm:$0xff]  ;;  %v4608_v54 = vld [vmem:[#allocation50_spill] sm:$0xff]  ;;  %v487_v58 = vadd.f32 %v486_v59, %v485_v19  ;;  %v482_v2 = vadd.f32 %v481_v50, %v480_v25  ;;  %v4634_v50 = vld [vmem:[#allocation64_spill] sm:$0xff] }
  0xe3   :  { %822 = vmatpush.msrb.mxu0 %v3726_v53  ;;  %787 = vmatpush.msrb.mxu1 %v3828_v24  ;;  %v446_v53 = vadd.f32 %v445_v42, %v444_v8  ;;  %v4603_v24 = vld [vmem:[#allocation34_spill] sm:$0xff]  ;;  %v462_v42 = vmul.f32 %v4039_v34, %v4039_v34  ;;  %v4629_v19 = vld [vmem:[#allocation65_spill] sm:$0xff] }
  0xe4   :  { %v438_v51 = vrot.slane %v437_v49, 2  ;;  %v378_v22 = vpop.f32.mrf.mxu0  ;;  %v494_v23 = vadd.f32 %v493_v43, %v492_v15  ;;  %2673 = vmatmul.msk.f32.vlgmr.msra.gmra.mxu1 %vm611_vm3, %v456_v35  ;;  %847 = vmatpush.msra.mxu2 %v4604_v48  ;;  %v488_v5 = vrot.slane %v487_v58, 2  ;;  %v483_v4 = vrot.slane %v482_v2, 1  ;;  %v4625_v15 = vld [vmem:[#allocation58_spill] sm:$0xff]  ;;  %v4628_v35 = vld [vmem:[#allocation31_spill] sm:$0xff] }
  0xe5   :  { %823 = vmatpush.msrb.mxu0 %v3734_v55  ;;  %788 = vmatpush.msrb.mxu1 %v3838_v28  ;;  %v475_v28 = vadd.f32 %v474_v45, %v473_v39  ;;  %v447_v14 = vrot.slane %v446_v53, 1  ;;  %v4624_v39 = vld [vmem:[#allocation41_spill] sm:$0xff]  ;;  %v4627_v25 = vld [vmem:[#allocation42_spill] sm:$0xff]  ;;  %v4631_v45 = vld [vmem:[#allocation43_spill] sm:$0xff]  ;;  %v499_v59 = vsel %vm406_vm1, %v462_v42, 0.0 }
  0xe6   :  { %v439_v44 = vadd.f32 %v438_v51, %v437_v49  ;;  %810 = vmatpush.msrb.mxu3 %v4606_v3  ;;  %848 = vmatpush.msra.mxu2 %v4608_v54  ;;  %v495_v62 = vrot.slane %v494_v23, 2  ;;  %v484_v46 = vadd.f32 %v483_v4, %v482_v2  ;;  %v489_v38 = vadd.f32 %v488_v5, %v487_v58  ;;  %v4626_v49 = vld [vmem:[#allocation62_spill] sm:$0xff]  ;;  %v4630_v51 = vld [vmem:[#allocation61_spill] sm:$0xff]  ;;  %v4646_v2 = vld [vmem:[#allocation68_spill] sm:$0xff] }
  0xe7   :  { %824 = vmatpush.msrb.mxu0 %v3740_v57  ;;  %789 = vmatpush.msrb.mxu1 %v4603_v24  ;;  %v508_v57 = vadd.f32 %v507_v10, %v506_v41  ;;  %v476_v20 = vrot.slane %v475_v28, 1  ;;  %v448_v18 = vadd.f32 %v447_v14, %v446_v53  ;;  %v4633_v53 = vld [vmem:[#allocation67_spill] sm:$0xff]  ;;  %v4635_v10 = vld [vmem:[#allocation44_spill] sm:$0xff]  ;;  %v500_v3 = vrot.slane %v499_v59, 4  ;;  %v4642_v14 = vld [vmem:[#allocation57_spill] sm:$0xff] }
  0xe8   :  { %v440_v55 = vrot.slane %v439_v44, 1  ;;  %811 = vmatpush.msrb.mxu3 %v4610_v33  ;;  %849 = vmatpush.msra.mxu2 %v4613_v27  ;;  %v496_v6 = vadd.f32 %v495_v62, %v494_v23  ;;  %v490_v22 = vrot.slane %v489_v38, 1  ;;  %v4636_v23 = vld [vmem:[#allocation33_spill] sm:$0xff]  ;;  %v4644_v62 = vld [vmem:[#allocation63_spill] sm:$0xff]  ;;  %v4645_v33 = vld [vmem:[#allocation66_spill] sm:$0xff] }
  0xe9   :  { %825 = vmatpush.msrb.mxu0 %v4605_v56  ;;  %790 = vmatpush.msrb.mxu1 %v4607_v7  ;;  %v509_v30 = vrot.slane %v508_v57, 2  ;;  %v477_v8 = vadd.f32 %v476_v20, %v475_v28  ;;  %v4638_v56 = vld [vmem:[#allocation35_spill] sm:$0xff]  ;;  %v4639_v28 = vld [vmem:[#allocation48_spill] sm:$0xff]  ;;  %v501_v54 = vadd.f32 %v500_v3, %v499_v59  ;;  %v4648_v27 = vld [vmem:[#allocation70_spill] sm:$0xff] }
  0xea   :  { %v441_v31 = vadd.f32 %v440_v55, %v439_v44  ;;  %812 = vmatpush.msrb.mxu3 %v4615_v37  ;;  %850 = vmatpush.msra.mxu2 %v4617_v52  ;;  %v497_v16 = vrot.slane %v496_v6, 1  ;;  %v4632_v44 = vld [vmem:[#allocation32_spill] sm:$0xff]  ;;  %v491_v24 = vadd.f32 %v490_v22, %v489_v38  ;;  %v4637_v55 = vld [vmem:[#allocation45_spill] sm:$0xff]  ;;  %v4640_v7 = vld [vmem:[#allocation51_spill] sm:$0xff] }
  0xeb   :  { %826 = vmatpush.msrb.mxu0 %v4609_v60  ;;  %791 = vmatpush.msrb.mxu1 %v4611_v61  ;;  %v510_v12 = vadd.f32 %v509_v30, %v508_v57  ;;  %v502_v58 = vrot.slane %v501_v54, 2  ;;  %v4643_v57 = vld [vmem:[#allocation60_spill] sm:$0xff]  ;;  %v929_v59 = vld [vmem:[#allocation7 + $0x50] sm:$0xff] }
  0xec   :  { %711 = vmatmul.f32.vlgmr.msra.gmra.mxu3 %v441_v31  ;;  %851 = vmatpush.msra.mxu2 %v4621_v13  ;;  %v498_v41 = vadd.f32 %v497_v16, %v496_v6  ;;  %v4641_v31 = vld [vmem:[#allocation54_spill] sm:$0xff]  ;;  %v927_v42 = vld [vmem:[#allocation7 + $0x40] sm:$0xff] }
  0xed   :  { %827 = vmatpush.msrb.mxu0 %v4612_v1  ;;  %792 = vmatpush.msrb.mxu1 %v4614_v0  ;;  %v511_v43 = vrot.slane %v510_v12, 1  ;;  %v503_v60 = vadd.f32 %v502_v58, %v501_v54  ;;  %v4647_v1 = vld [vmem:[#allocation69_spill] sm:$0xff]  ;;  %v4649_v0 = vld [vmem:[#allocation71_spill] sm:$0xff] }
  0xee   :  { %813 = vmatpush.msrb.mxu3 %v4619_v47  ;;  %731 = vmatmul.f32.vlgmr.msra.gmra.mxu0 %v448_v18 }
  0xef   :  { %828 = vmatpush.msrb.mxu0 %v4616_v21  ;;  %793 = vmatpush.msrb.mxu1 %v4618_v9  ;;  %v512_v48 = vadd.f32 %v511_v43, %v510_v12  ;;  %v504_v61 = vrot.slane %v503_v60, 1 }
  0xf0   :  { %814 = vmatpush.msrb.mxu3 %v4625_v15  ;;  %852 = vmatpush.msra.mxu2 %v4626_v49  ;;  %v926_v49 = vld [vmem:[#allocation7 + $0x38] sm:$0xff] }
  0xf1   :  { %829 = vmatpush.msrb.mxu0 %v4620_v36  ;;  %794 = vmatpush.msrb.mxu1 %v4622_v29  ;;  %v505_v20 = vadd.f32 %v504_v61, %v503_v60 }
  0xf2   :  { %795 = vmatmul.f32.vlgmr.msrb.gmra.mxu1 %v477_v8  ;;  %853 = vmatpush.msra.mxu2 %v4629_v19  ;;  %v919_v19 = vld [vmem:[#allocation7] sm:$0xff] }
  0xf3   :  { %830 = vmatpush.msrb.mxu0 %v4623_v11  ;;  %859 = vmatpush.msra.mxu1 %v4624_v39 }
  0xf4   :  { %815 = vmatmul.f32.vlgmr.msrb.gmra.mxu3 %v484_v46  ;;  %854 = vmatpush.msra.mxu2 %v4633_v53 }
  0xf5   :  { %860 = vmatpush.msra.mxu1 %v4627_v25  ;;  %831 = vmatpush.msrb.mxu0 %v4628_v35  ;;  %v928_v25 = vld [vmem:[#allocation7 + $0x48] sm:$0xff]  ;;  %v4152_v35 = vld [vmem:[#allocation7 + $0x60] sm:$0xff] }
  0xf6   :  { %893 = vmatpush.msra.mxu3 %v4630_v51  ;;  %855 = vmatmul.f32.vlgmr.msra.gmra.mxu2 %v498_v41  ;;  %v920_v41 = vld [vmem:[#allocation7 + $0x8] sm:$0xff]  ;;  %v921_v51 = vld [vmem:[#allocation7 + $0x10] sm:$0xff] }
  0xf7   :  { %861 = vmatpush.msra.mxu1 %v4631_v45  ;;  %832 = vmatpush.msrb.mxu0 %v4632_v44  ;;  %v924_v45 = vld [vmem:[#allocation7 + $0x28] sm:$0xff] }
  0xf8   :  { %894 = vmatpush.msra.mxu3 %v4634_v50  ;;  %990 = vmatpush.msrb.mxu2 %v928_v25 }
  0xf9   :  { %862 = vmatpush.msra.mxu1 %v4635_v10  ;;  %833 = vmatpush.msrb.mxu0 %v4636_v23  ;;  %v930_v10 = vld [vmem:[#allocation7 + $0x58] sm:$0xff]  ;;  %v932_v23 = vld [vmem:[#allocation7 + $0x68] sm:$0xff] }
  0xfa   :  { %950 = vmatpush.msrb.mxu3 %v926_v49  ;;  %991 = vmatpush.msrb.mxu2 %v921_v51 }
  0xfb   :  { %863 = vmatpush.msra.mxu1 %v4637_v55  ;;  %834 = vmatpush.msrb.mxu0 %v4638_v56  ;;  %v923_v55 = vld [vmem:[#allocation7 + $0x20] sm:$0xff]  ;;  %v925_v56 = vld [vmem:[#allocation7 + $0x30] sm:$0xff] }
  0xfc   :  { %835 = vmatmul.f32.vlgmr.msrb.gmra.mxu0 %v491_v24  ;;  %2674 = vmatmul.msk.f32.vlgmr.msra.gmra.mxu3 %vm611_vm3, %v512_v48  ;;  %v922_v48 = vld [vmem:[#allocation7 + $0x18] sm:$0xff] }
  0xfd   :  { %864 = vmatpush.msra.mxu1 %v4639_v28  ;;  %970 = vmatpush.msra.mxu0 %v927_v42 }
  0xfe   :  { %951 = vmatpush.msrb.mxu3 %v919_v19  ;;  %1070 = vmatpush.msra.mxu2 %v932_v23 }
  0xff   :  { %865 = vmatpush.msra.mxu1 %v4640_v7  ;;  %971 = vmatpush.msra.mxu0 %v920_v41 }
 0x100   :  { %1010 = vmatpush.msra.mxu3 %v929_v59  ;;  %1071 = vmatpush.msra.mxu2 %v925_v56 }
 0x101   :  { %866 = vmatpush.msra.mxu1 %v4641_v31  ;;  %1030 = vmatpush.msrb.mxu0 %v930_v10 }
 0x102   :  { %1011 = vmatpush.msra.mxu3 %v922_v48 }
 0x103   :  { %867 = vmatpush.msra.mxu1 %v4642_v14  ;;  %1031 = vmatpush.msrb.mxu0 %v923_v55 }
 0x105   :  { %868 = vmatpush.msra.mxu1 %v4643_v57 }
 0x107   :  { %869 = vmatpush.msra.mxu1 %v4644_v62 }
 0x109   :  { %870 = vmatpush.msra.mxu1 %v4645_v33  ;;  %v903_v33 = vld [vmem:[%s4489_s5] sm:$0x1]  ;;  %s3467_s5 = smov 16  }
 0x10b   :  { %871 = vmatpush.msra.mxu1 %v4646_v2 }
 0x10d   :  { %872 = vmatpush.msra.mxu1 %v4647_v1 }
 0x10f   :  { %873 = vmatpush.msra.mxu1 %v4648_v27 }
 0x111   :  { %874 = vmatpush.msra.mxu1 %v4649_v0 }
 0x112   :  { %875 = vmatmul.f32.vlgmr.msra.gmra.mxu1 %v505_v20  ;;  %v916_v20 = vld [vmem:[#allocation8] sm:$0x1] }
 0x113   :  { %1050 = vmatpush.msrb.mxu1 %v4152_v35 }
 0x115   :  { %1051 = vmatpush.msrb.mxu1 %v924_v45 }
 0x117   :  { %1133 = vmatpush.msra.mxu1 %v928_v25 }
 0x119   :  { %1134 = vmatpush.msra.mxu1 %v921_v51 }
 0x14e   :  { %v632_v18 = vpop.f32.mrf.mxu3 }
 0x14f   :  { %v672_v37 = vpop.f32.mrf.mxu1 }
 0x156   :  { %v692_v21 = vpop.f32.mrf.mxu2 }
 0x159   :  { %v652_v5 = vpop.f32.mrf.mxu0 }
 0x15a   :  { %v653_v4 = vadd.f32 %v652_v5, %v632_v18 }
 0x15c   :  { %v673_v9 = vadd.f32 %v672_v37, %v653_v4 }
 0x15e   :  { %v693_v36 = vadd.f32 %v692_v21, %v673_v9  ;;  %v776_v8 = vpop.f32.mrf.mxu2 }
 0x161   :  { %v752_v30 = vpop.f32.mrf.mxu1 }
 0x16b   :  { %v732_v6 = vpop.f32.mrf.mxu0 }
 0x16f   :  { %v712_v52 = vpop.f32.mrf.mxu3  ;;  %v796_v47 = vpop.f32.mrf.mxu1 }
 0x170   :  { %v797_v29 = vadd.f32 %v796_v47, %v776_v8  ;;  %v713_v12 = vadd.f32 %v712_v52, %v693_v36 }
 0x172   :  { %v733_v16 = vadd.f32 %v732_v6, %v713_v12 }
 0x174   :  { %v753_v15 = vadd.f32 %v752_v30, %v733_v16 }
 0x176   :  { %v755_v44 = vmul.f32 0.010204081, %v753_v15 }
 0x177   :  { %v816_v13 = vpop.f32.mrf.mxu3 }
 0x178   :  { %v817_v11 = vadd.f32 %v816_v13, %v797_v29  ;;  %v900_v3 = vmul.f32 %v755_v44, %v755_v44 }
 0x179   :  { %v836_v46 = vpop.f32.mrf.mxu0  ;;  %v856_v39 = vpop.f32.mrf.mxu2 }
 0x17a   :  { %v837_v38 = vadd.f32 %v836_v46, %v817_v11 }
 0x17c   :  { %v857_v43 = vadd.f32 %v856_v39, %v837_v38 }
 0x17f   :  { %v896_v50 = vpop.f32.mrf.mxu3 }
 0x18f   :  { %v876_v22 = vpop.f32.mrf.mxu1 }
 0x190   :  { %v877_v53 = vadd.f32 %v876_v22, %v857_v43 }
 0x192   :  { %v897_v24 = vadd.f32 %v896_v50, %v877_v53 }
 0x194   :  { %v899_v28 = vmul.f32 0.010204081, %v897_v24 }
 0x196   :  { %v901_v7 = vsub.f32 %v899_v28, %v900_v3 }
 0x198   :  { %v902_v54 = vmax.f32 %v901_v7, 0.0 }
 0x19a   :  { %v904_v31 = vadd.f32 1e-05, %v902_v54 }
 0x19c   :  { %3181 = vrsqrt.f32 %v904_v31  ;;  %vm911_vm5 = vweird.f32 %v904_v31 }
 0x1a2   :  { %v3182_v14 = vpop.eup %3181 }
 0x1a3   :  { %v906_v58 = vmul.f32 %v3182_v14, %v904_v31  ;;  %vm912_vm4 = vweird.f32 %v3182_v14 }
 0x1a4   :  { %vm913_vm6 = vmor %vm911_vm5, %vm912_vm4  ;;  %vm2160_vm4 = vcmask 228352  }
 0x1a5   :  { %v907_v57 = vmul.f32 %v3182_v14, %v906_v58 }
 0x1a7   :  { %v908_v62 = vmul.f32 0.5, %v907_v57 }
 0x1a9   :  { %v909_v60 = vsub.f32 1.5, %v908_v62 }
 0x1ab   :  { %v910_v2 = vmul.f32 %v3182_v14, %v909_v60 }
 0x1ad   :  { %v914_v61 = vsel %vm913_vm6, %v3182_v14, %v910_v2 }
 0x1ae   :  { %v915_v1 = vmul.f32 %v914_v61, %v903_v33 }
 0x1b0   :  { %2675 = vmatmul.msk.f32.vlgmr.msrb.gmra.mxu3 %vm611_vm3, %v915_v1  ;;  %2676 = vmatmul.msk.f32.vlgmr.msra.gmra.mxu0 %vm611_vm3, %v915_v1  ;;  %v917_v27 = vmul.f32 %v915_v1, %v755_v44 }
 0x1b1   :  { %2677 = vmatmul.msk.f32.vlgmr.msrb.gmra.mxu2 %vm611_vm3, %v915_v1  ;;  %2680 = vmatmul.msk.f32.vlgmr.msrb.gmra.mxu1 %vm611_vm3, %v915_v1 }
 0x1b2   :  { %1093 = vmatpush.msrb.mxu3 %v926_v49  ;;  %1113 = vmatpush.msra.mxu0 %v927_v42  ;;  %v918_v0 = vsub.f32 %v916_v20, %v917_v27  ;;  %v4650_v42 = vld [vmem:[#allocation72_spill] sm:$0xff] }
 0x1b3   :  { %1153 = vmatpush.msrb.mxu2 %v929_v59  ;;  %1213 = vmatpush.msrb.mxu1 %v932_v23 }
 0x1b4   :  { %1094 = vmatpush.msrb.mxu3 %v919_v19  ;;  %1114 = vmatpush.msra.mxu0 %v920_v41 }
 0x1b5   :  { %1154 = vmatpush.msrb.mxu2 %v922_v48  ;;  %1214 = vmatpush.msrb.mxu1 %v925_v56 }
 0x1b8   :  { %2678 = vmatmul.msk.f32.vlgmr.msra.gmra.mxu3 %vm611_vm3, %v915_v1  ;;  %2679 = vmatmul.msk.f32.vlgmr.msrb.gmra.mxu0 %vm611_vm3, %v915_v1 }
 0x1b9   :  { %2681 = vmatmul.msk.f32.vlgmr.msra.gmra.mxu2 %vm611_vm3, %v915_v1  ;;  %2684 = vmatmul.msk.f32.vlgmr.msra.gmra.mxu1 %vm611_vm3, %v918_v0 }
 0x1ba   :  { %1173 = vmatpush.msra.mxu3 %v930_v10  ;;  %1193 = vmatpush.msrb.mxu0 %v4152_v35 }
 0x1bc   :  { %1174 = vmatpush.msra.mxu3 %v923_v55  ;;  %1194 = vmatpush.msrb.mxu0 %v924_v45 }
 0x1c0   :  { %2682 = vmatmul.msk.f32.vlgmr.msrb.gmra.mxu3 %vm611_vm3, %v918_v0  ;;  %2683 = vmatmul.msk.f32.vlgmr.msra.gmra.mxu0 %vm611_vm3, %v918_v0 }
 0x1c1   :  { %2685 = vmatmul.msk.f32.vlgmr.msrb.gmra.mxu2 %vm611_vm3, %v918_v0  ;;  %2688 = vmatmul.msk.f32.vlgmr.msrb.gmra.mxu1 %vm611_vm3, %v918_v0 }
 0x1c8   :  { %2686 = vmatmul.msk.f32.vlgmr.msra.gmra.mxu3 %vm611_vm3, %v918_v0  ;;  %2687 = vmatmul.msk.f32.vlgmr.msrb.gmra.mxu0 %vm611_vm3, %v918_v0 }
 0x22d   :  { %v973_v37 = vpop.f32.mrf.mxu0 }
 0x22e   :  { %v1053_v18 = vpop.f32.mrf.mxu1  ;;  %v1220_v9 = vperm.slane %v973_v37, 0 }
 0x22f   :  { %v1224_v16 = vperm.slane %v1053_v18, 0 }
 0x230   :  { %v1227_v12 = vmul.f32 %v1220_v9, %v4031_v63  ;;  %v3074_v9 = vld [vmem:[%s4492_s8 + $0x18] sm:$0xff] }
 0x233   :  { %v953_v5 = vpop.f32.mrf.mxu3 }
 0x234   :  { %v993_v30 = vpop.f32.mrf.mxu2  ;;  %v1219_v11 = vperm.slane %v953_v5, 0  ;;  %v3077_v5 = vld [vmem:[%s4492_s8 + $0x30] sm:$0xff] }
 0x235   :  { %v1033_v21 = vpop.f32.mrf.mxu0  ;;  %v1221_v4 = vperm.slane %v993_v30, 0  ;;  %v3084_v30 = vld [vmem:[%s4492_s8 + $0x68] sm:$0xff]  ;;  %1380 = vmatpush.bf16.msra.mxu2 %v3077_v5  ;;  %v3086_v5 = vld [vmem:[%s4492_s8 + $0x78] sm:$0xff] }
 0x236   :  { %v1136_v52 = vpop.f32.mrf.mxu1  ;;  %v1226_v25 = vmul.f32 %v1219_v11, %v4650_v42  ;;  %v1223_v23 = vperm.slane %v1033_v21, 0  ;;  %1455 = vmatpush.bf16.msrb.mxu3 %v3084_v30  ;;  %v3076_v21 = vld [vmem:[%s4492_s8 + $0x28] sm:$0xff]  ;;  %v3078_v11 = vld [vmem:[%s4492_s8 + $0x38] sm:$0xff]  ;;  %v3093_v30 = vld [vmem:[%s4492_s8 + $0xb0] sm:$0xff] }
 0x237   :  { %v1228_v13 = vmul.f32 %v1221_v4, %v4022_v17  ;;  %v1235_v29 = vperm.slane %v1136_v52, 0  ;;  %v1231_v17 = vmul.f32 %v1224_v16, %v4039_v34  ;;  %v3083_v52 = vld [vmem:[%s4492_s8 + $0x60] sm:$0xff] }
 0x238   :  { %v1230_v54 = vmul.f32 %v1223_v23, %v4066_v26  ;;  %v3075_v4 = vld [vmem:[%s4492_s8 + $0x20] sm:$0xff] }
 0x239   :  { %v1242_v39 = vadd.f32 %v1235_v29, %v1228_v13  ;;  %1381 = vmatpush.bf16.msra.mxu2 %v3076_v21  ;;  %v3072_v13 = vld [vmem:[%s4492_s8 + $0x8] sm:$0xff]  ;;  %v3079_v29 = vld [vmem:[%s4492_s8 + $0x40] sm:$0xff] }
 0x23a   :  { %1456 = vmatpush.bf16.msrb.mxu3 %v3083_v52  ;;  %v1472_v21 = vld [vmem:[#allocation10 + $0x38] sm:$0xf] }
 0x23b   :  { %v1013_v6 = vpop.f32.mrf.mxu3  ;;  %v1249_v53 = vmax.f32 %v1242_v39, 0.0  ;;  %v1396_v52 = vld [vmem:[#allocation10 + $0x18] sm:$0xf] }
 0x23c   :  { %v1073_v47 = vpop.f32.mrf.mxu2  ;;  %v1222_v46 = vperm.slane %v1013_v6, 0  ;;  %v3082_v6 = vld [vmem:[%s4492_s8 + $0x58] sm:$0xff] }
 0x23d   :  { %v1116_v36 = vpop.f32.mrf.mxu0  ;;  %v1225_v15 = vperm.slane %v1073_v47, 0  ;;  %v1274_v28 = vrot.slane %v1249_v53, 2  ;;  %v1266_v61 = vrot.slane %v1249_v53, 4  ;;  %1382 = vmatpush.bf16.msra.mxu2 %v3075_v4  ;;  %v3081_v47 = vld [vmem:[%s4492_s8 + $0x50] sm:$0xff] }
 0x23e   :  { %v1234_v8 = vperm.slane %v1116_v36, 0  ;;  %v1216_v35 = vpop.f32.mrf.mxu1  ;;  %v1229_v41 = vmul.f32 %v1222_v46, %v4024_v40  ;;  %1457 = vmatpush.bf16.msrb.mxu3 %v3082_v6  ;;  %v3073_v36 = vld [vmem:[%s4492_s8 + $0x10] sm:$0xff]  ;;  %v3092_v6 = vld [vmem:[%s4492_s8 + $0xa8] sm:$0xff] }
 0x23f   :  { %v1232_v50 = vmul.f32 %v1225_v15, %v4042_v32  ;;  %v1239_v59 = vperm.slane %v1216_v35, 0  ;;  %v3085_v4 = vld [vmem:[%s4492_s8 + $0x70] sm:$0xff] }
 0x240   :  { %v1241_v38 = vadd.f32 %v1234_v8, %v1227_v12  ;;  %v3080_v8 = vld [vmem:[%s4492_s8 + $0x48] sm:$0xff]  ;;  %v3071_v12 = vld [vmem:[%s4492_s8] sm:$0xff] }
 0x241   :  { %v1246_v3 = vadd.f32 %v1239_v59, %v1232_v50  ;;  %1383 = vmatpush.bf16.msra.mxu2 %v3074_v9 }
 0x242   :  { %v1248_v45 = vmax.f32 %v1241_v38, 0.0  ;;  %1458 = vmatpush.bf16.msrb.mxu3 %v3081_v47 }
 0x243   :  { %v1096_v49 = vpop.f32.mrf.mxu3  ;;  %v1253_v62 = vmax.f32 %v1246_v3, 0.0 }
 0x244   :  { %v1233_v43 = vperm.slane %v1096_v49, 0  ;;  %v1156_v19 = vpop.f32.mrf.mxu2  ;;  %v1257_v56 = vrot.slane %v1248_v45, 6  ;;  %v1265_v60 = vrot.slane %v1248_v45, 4 }
 0x245   :  { %v1236_v51 = vperm.slane %v1156_v19, 0  ;;  %v1196_v22 = vpop.f32.mrf.mxu0  ;;  %v1303_v27 = vrot.slane %v1253_v62, 4  ;;  %1384 = vmatpush.bf16.msra.mxu2 %v3073_v36  ;;  %v3090_v62 = vld [vmem:[%s4492_s8 + $0x98] sm:$0xff] }
 0x246   :  { %v4178_v63 = vadd.f32 %v1233_v43, %v1226_v25  ;;  %v1238_v44 = vperm.slane %v1196_v22, 0  ;;  %v3153_v20 = vpack.i.bf16 %v1266_v61, %v1265_v60  ;;  %1459 = vmatpush.bf16.msrb.mxu3 %v3080_v8  ;;  %v3097_v60 = vld [vmem:[%s4492_s8 + $0xd0] sm:$0xff] }
 0x247   :  { %v1243_v10 = vadd.f32 %v1236_v51, %v1229_v41  ;;  %v3089_v61 = vld [vmem:[%s4492_s8 + $0x90] sm:$0xff] }
 0x248   :  { %v1247_v24 = vmax.f32 %v4178_v63, 0.0  ;;  %v1245_v55 = vadd.f32 %v1238_v44, %v1231_v17 }
 0x249   :  { %v1250_v48 = vmax.f32 %v1243_v10, 0.0  ;;  %1385 = vmatpush.bf16.msra.mxu2 %v3072_v13 }
 0x24a   :  { %v1256_v40 = vrot.slane %v1247_v24, 6  ;;  %v1252_v32 = vmax.f32 %v1245_v55, 0.0  ;;  %1460 = vmatpush.bf16.msrb.mxu3 %v3079_v29 }
 0x24b   :  { %v1176_v34 = vpop.f32.mrf.mxu3  ;;  %v1275_v7 = vrot.slane %v1250_v48, 2 }
 0x24c   :  { %v1237_v31 = vperm.slane %v1176_v34, 0  ;;  %v3148_v14 = vpack.i.bf16 %v1257_v56, %v1256_v40  ;;  %v1302_v2 = vrot.slane %v1252_v32, 4  ;;  %v1293_v37 = vrot.slane %v1252_v32, 6  ;;  %v1393_v32 = vld [vmem:[#allocation10] sm:$0xff] }
 0x24d   :  { %v3168_v58 = vpack.i.bf16 %v1275_v7, %v1274_v28  ;;  %1386 = vmatpush.bf16.msra.mxu2 %v3071_v12 }
 0x24e   :  { %v1244_v57 = vadd.f32 %v1237_v31, %v1230_v54  ;;  %3149 = vrot.lane.b32.xlu0 %v3148_v14, %s3467_s5  ;;  %v3173_v26 = vpack.i.bf16 %v1303_v27, %v1302_v2  ;;  %1461 = vmatpush.bf16.msrb.mxu3 %v3078_v11  ;;  %v1469_v14 = vld [vmem:[#allocation10 + $0x20] sm:$0xff]  ;;  %v1394_v2 = vld [vmem:[#allocation10 + $0x8] sm:$0xff] }
 0x24f   :  { %3169 = vrot.lane.b32.xlu2 %v3168_v58, %s3468_s4  ;;  %v3091_v58 = vld [vmem:[%s4492_s8 + $0xa0] sm:$0xff]  ;;  %v3088_v27 = vld [vmem:[%s4492_s8 + $0x88] sm:$0xff] }
 0x250   :  { %v1251_v33 = vmax.f32 %v1244_v57, 0.0  ;;  %v3098_v57 = vld [vmem:[%s4492_s8 + $0xd8] sm:$0xff] }
 0x252   :  { %v3158_v1 = vpack.i.bf16 %v1251_v33, %v1250_v48  ;;  %v1292_v0 = vrot.slane %v1251_v33, 6  ;;  %v1470_v33 = vld [vmem:[#allocation10 + $0x28] sm:$0xff] }
 0x254   :  { %3159 = vrot.lane.b32.xlu1 %v3158_v1, %s3469_s28  ;;  %v3163_v18 = vpack.i.bf16 %v1293_v37, %v1292_v0  ;;  %v3096_v1 = vld [vmem:[%s4492_s8 + $0xc8] sm:$0xff]  ;;  %v1395_v0 = vld [vmem:[#allocation10 + $0x10] sm:$0xff] }
 0x255   :  { %v3087_v37 = vld [vmem:[%s4492_s8 + $0x80] sm:$0xff] }
 0x256   :  { %3154 = vrot.lane.b32.xlu0 %v3153_v20, %s3470_s29  ;;  %v3095_v20 = vld [vmem:[%s4492_s8 + $0xc0] sm:$0xff] }
 0x257   :  { %3174 = vrot.lane.b32.xlu2 %v3173_v26, %s3471_s0  ;;  %v1471_v26 = vld [vmem:[#allocation10 + $0x30] sm:$0xff] }
 0x25c   :  { %3164 = vrot.lane.b32.xlu1 %v3163_v18, %s3472_s30  ;;  %v3094_v18 = vld [vmem:[%s4492_s8 + $0xb8] sm:$0xff] }
 0x2a9   :  { %v3170_v16 = vpop.permute.xlu2 %3169 }
 0x2aa   :  { %v3172_v19 = vunpack.i.h.bf16 %v3170_v16  ;;  %v3171_v17 = vunpack.i.l.bf16 %v3170_v16 }
 0x2ac   :  { %v1281_v40 = vsel %vm1280_vm7, %v3171_v17, %v3172_v19  ;;  %v1635_v19 = vld [vmem:[#allocation10 + $0x48] sm:$0xff]  ;;  %v1637_v17 = vld [vmem:[#allocation10 + $0x58] sm:$0xf]  ;;  %vm2594_vm7 = vcmask 457728  }
 0x2b1   :  { %v3175_v35 = vpop.permute.xlu2 %3174 }
 0x2b2   :  { %v3177_v45 = vunpack.i.h.bf16 %v3175_v35  ;;  %v3176_v44 = vunpack.i.l.bf16 %v3175_v35  ;;  %v1634_v35 = vld [vmem:[#allocation10 + $0x40] sm:$0xff] }
 0x2b4   :  { %v1309_v56 = vsel %vm1308_vm11, %v3176_v44, %v3177_v45  ;;  %v1761_v45 = vld [vmem:[#allocation10 + $0x78] sm:$0xf]  ;;  %v1862_v44 = vld [vmem:[#allocation13 + $0x68] sm:$0xff] }
 0x2c0   :  { %v3150_v46 = vpop.permute.xlu0 %3149 }
 0x2c1   :  { %v3152_v39 = vunpack.i.h.bf16 %v3150_v46  ;;  %v3151_v15 = vunpack.i.l.bf16 %v3150_v46 }
 0x2c3   :  { %v1262_v43 = vsel %vm611_vm3, %v3151_v15, %v3152_v39  ;;  %vm1931_vm3 = vcmask 64512  }
 0x2c4   :  { %v1311_v50 = vsel %vm406_vm1, %v1247_v24, %v1262_v43  ;;  %v1758_v43 = vld [vmem:[#allocation10 + $0x60] sm:$0xff] }
 0x2c6   :  { %v3160_v38 = vpop.permute.xlu1 %3159 }
 0x2c7   :  { %v3162_v41 = vunpack.i.h.bf16 %v3160_v38  ;;  %v3161_v51 = vunpack.i.l.bf16 %v3160_v38 }
 0x2c8   :  { %v3155_v49 = vpop.permute.xlu0 %3154 }
 0x2c9   :  { %v3157_v42 = vunpack.i.h.bf16 %v3155_v49  ;;  %v3156_v25 = vunpack.i.l.bf16 %v3155_v49  ;;  %v1289_v48 = vsel %vm1288_vm8, %v3161_v51, %v3162_v41  ;;  %v1759_v41 = vld [vmem:[#allocation10 + $0x68] sm:$0xff]  ;;  %v1636_v51 = vld [vmem:[#allocation10 + $0x50] sm:$0xff] }
 0x2cb   :  { %v1271_v22 = vsel %vm311_vm0, %v3156_v25, %v3157_v42 }
 0x2cc   :  { %v1313_v23 = vsel %vm1312_vm9, %v1311_v50, %v1271_v22  ;;  %v1760_v22 = vld [vmem:[#allocation10 + $0x70] sm:$0xff]  ;;  %v1860_v50 = vld [vmem:[#allocation13 + $0x58] sm:$0xff] }
 0x2cd   :  { %v1315_v34 = vsel %vm1314_vm12, %v1313_v23, %v1281_v40  ;;  %v1857_v23 = vld [vmem:[#allocation13 + $0x40] sm:$0xff] }
 0x2ce   :  { %v3165_v53 = vpop.permute.xlu1 %3164 }
 0x2cf   :  { %v3167_v59 = vunpack.i.h.bf16 %v3165_v53  ;;  %v3166_v10 = vunpack.i.l.bf16 %v3165_v53  ;;  %v1861_v53 = vld [vmem:[#allocation13 + $0x60] sm:$0xff] }
 0x2d1   :  { %v1299_v55 = vsel %vm1298_vm10, %v3166_v10, %v3167_v59  ;;  %v1859_v59 = vld [vmem:[#allocation13 + $0x50] sm:$0xff]  ;;  %v1858_v10 = vld [vmem:[#allocation13 + $0x48] sm:$0xff] }
 0x2d2   :  { %v1316_v3 = vsel %vm406_vm1, %v1289_v48, %v1299_v55  ;;  %v1856_v48 = vld [vmem:[#allocation13 + $0x38] sm:$0xff] }
 0x2d3   :  { %v1317_v28 = vsel %vm1312_vm9, %v1316_v3, %v1309_v56  ;;  %v1855_v56 = vld [vmem:[#allocation13 + $0x30] sm:$0xff]  ;;  %v1854_v3 = vld [vmem:[#allocation13 + $0x28] sm:$0xff] }
 0x2d4   :  { %v1318_v63 = vpack.c.bf16 %v1317_v28, %v1315_v34  ;;  %v1853_v34 = vld [vmem:[#allocation13 + $0x20] sm:$0xff]  ;;  %v1852_v28 = vld [vmem:[#allocation13 + $0x18] sm:$0xff] }
 0x2d6   :  { %2717 = vmatmul.msk.bf16.vlgmr.msra.gmra.mxu2 %vm1375_vm13, %v1318_v63  ;;  %2760 = vmatmul.msk.bf16.vlgmr.msrb.gmra.mxu3 %vm1375_vm13, %v1318_v63 }
 0x359   :  { %v1388_v24 = vpop.f32.mrf.mxu2  ;;  %v1463_v7 = vpop.f32.mrf.mxu3 }
 0x361   :  { %v1390_v54 = vpop.f32.mrf.mxu2  ;;  %v1465_v31 = vpop.f32.mrf.mxu3 }
 0x362   :  { %2761 = vmatpush.msk.msra.mxu0 %vm1314_vm12, %v1465_v31  ;;  %2766 = vmatpush.msk.msra.mxu1 %vm1314_vm12, %v1390_v54  ;;  %v1850_v54 = vld [vmem:[#allocation13 + $0x8] sm:$0xff] }
 0x364   :  { %1504 = vmatpush.msra.mxu0 %v1463_v7  ;;  %1548 = vmatpush.msra.mxu1 %v1388_v24  ;;  %v1851_v7 = vld [vmem:[#allocation13 + $0x10] sm:$0xff] }
 0x365   :  { %2762 = vmatmul.msk.f32.vlgmr.msra.gmra.mxu0 %vm1473_vm14, %v1469_v14  ;;  %2767 = vmatmul.msk.f32.vlgmr.msra.gmra.mxu1 %vm1473_vm14, %v1393_v32  ;;  %v1849_v14 = vld [vmem:[#allocation13] sm:$0xff] }
 0x366   :  { %1620 = vmatpush.bf16.msrb.mxu0 %v3091_v58  ;;  %1744 = vmatpush.bf16.msrb.mxu1 %v3098_v57 }
 0x36a   :  { %1621 = vmatpush.bf16.msrb.mxu0 %v3090_v62  ;;  %1745 = vmatpush.bf16.msrb.mxu1 %v3097_v60 }
 0x36d   :  { %2763 = vmatmul.msk.f32.gmra.mxu0 %vm1473_vm14, %v1470_v33  ;;  %2768 = vmatmul.msk.f32.gmra.mxu1 %vm1473_vm14, %v1394_v2  ;;  %v3179_v33 = vld [vmem:[#allocation11] ss:$0 sm:$0xff] }
 0x36e   :  { %1622 = vmatpush.bf16.msrb.mxu0 %v3089_v61  ;;  %1746 = vmatpush.bf16.msrb.mxu1 %v3096_v1 }
 0x372   :  { %1623 = vmatpush.bf16.msrb.mxu0 %v3088_v27  ;;  %1747 = vmatpush.bf16.msrb.mxu1 %v3095_v20 }
 0x375   :  { %2764 = vmatmul.msk.f32.gmra.mxu0 %vm1473_vm14, %v1471_v26  ;;  %2769 = vmatmul.msk.f32.gmra.mxu1 %vm1473_vm14, %v1395_v0 }
 0x376   :  { %1624 = vmatpush.bf16.msrb.mxu0 %v3087_v37  ;;  %1748 = vmatpush.bf16.msrb.mxu1 %v3094_v18 }
 0x37a   :  { %1625 = vmatpush.bf16.msrb.mxu0 %v3086_v5  ;;  %1749 = vmatpush.bf16.msrb.mxu1 %v3093_v30 }
 0x37d   :  { %2765 = vmatmul.msk.f32.gmra.mxu0 %vm1473_vm14, %v1472_v21  ;;  %2770 = vmatmul.msk.f32.gmra.mxu1 %vm1473_vm14, %v1396_v52 }
 0x37e   :  { %1626 = vmatpush.bf16.msrb.mxu0 %v3085_v4  ;;  %1750 = vmatpush.bf16.msrb.mxu1 %v3092_v6 }
 0x382   :  { %1892 = vmatpush.msra.mxu1 %v1862_v44 }
 0x384   :  { %1893 = vmatpush.msra.mxu1 %v1861_v53 }
 0x385   :  { %2813 = vmatmul.msk.bf16.vlgmr.msrb.gmra.mxu0 %vm1375_vm13, %v1318_v63  ;;  %2861 = vmatmul.msk.bf16.vlgmr.msrb.gmra.mxu1 %vm1375_vm13, %v1318_v63 }
 0x386   :  { %1894 = vmatpush.msra.mxu1 %v1860_v50 }
 0x388   :  { %1895 = vmatpush.msra.mxu1 %v1859_v59 }
 0x38a   :  { %1896 = vmatpush.msra.mxu1 %v1858_v10 }
 0x38c   :  { %1897 = vmatpush.msra.mxu1 %v1857_v23 }
 0x38e   :  { %1898 = vmatpush.msra.mxu1 %v1856_v48 }
 0x390   :  { %1899 = vmatpush.msra.mxu1 %v1855_v56 }
 0x392   :  { %1900 = vmatpush.msra.mxu1 %v1854_v3 }
 0x394   :  { %1901 = vmatpush.msra.mxu1 %v1853_v34 }
 0x396   :  { %1902 = vmatpush.msra.mxu1 %v1852_v28 }
 0x398   :  { %1903 = vmatpush.msra.mxu1 %v1851_v7 }
 0x39a   :  { %1904 = vmatpush.msra.mxu1 %v1850_v54 }
 0x39c   :  { %1905 = vmatpush.msra.mxu1 %v1849_v14 }
 0x3e2   :  { %v1506_v9 = vpop.f32.mrf.mxu0  ;;  %v1550_v47 = vpop.f32.mrf.mxu1 }
 0x3e3   :  { %v4294_v36 = vadd.f32 %v1550_v47, %v1506_v9 }
 0x3ea   :  { %v1509_v8 = vpop.f32.mrf.mxu0  ;;  %v1553_v13 = vpop.f32.mrf.mxu1 }
 0x3eb   :  { %v4296_v29 = vadd.f32 %v1553_v13, %v1509_v8 }
 0x3f2   :  { %v1512_v12 = vpop.f32.mrf.mxu0  ;;  %v1556_v11 = vpop.f32.mrf.mxu1 }
 0x3f3   :  { %v4298_v46 = vadd.f32 %v1556_v11, %v1512_v12 }
 0x3fa   :  { %v1515_v16 = vpop.f32.mrf.mxu0  ;;  %v1559_v38 = vpop.f32.mrf.mxu1 }
 0x3fb   :  { %v4300_v39 = vadd.f32 %v1559_v38, %v1515_v16 }
 0x402   :  { %v1628_v15 = vpop.f32.mrf.mxu0  ;;  %v1752_v49 = vpop.f32.mrf.mxu1 }
 0x40a   :  { %v1630_v42 = vpop.f32.mrf.mxu0  ;;  %v1754_v25 = vpop.f32.mrf.mxu1 }
 0x40b   :  { %2814 = vmatpush.msk.msrb.mxu2 %vm1314_vm12, %v1630_v42  ;;  %2862 = vmatpush.msk.msra.mxu3 %vm1314_vm12, %v1754_v25 }
 0x40d   :  { %1668 = vmatpush.msrb.mxu2 %v1628_v15  ;;  %1792 = vmatpush.msra.mxu3 %v1752_v49 }
 0x40e   :  { %2815 = vmatmul.msk.f32.vlgmr.msrb.gmra.mxu2 %vm1473_vm14, %v1634_v35  ;;  %2863 = vmatmul.msk.f32.vlgmr.msra.gmra.mxu3 %vm1473_vm14, %v1758_v43 }
 0x40f   :  { %1868 = vmatpush.msra.mxu2 %v1862_v44 }
 0x411   :  { %1869 = vmatpush.msra.mxu2 %v1861_v53  ;;  %v1930_v53 = vld [vmem:[%s4495_s11] sm:$0xff] }
 0x412   :  { %1973 = vmatpush.msrb.mxu3 %v1930_v53 }
 0x413   :  { %1870 = vmatpush.msra.mxu2 %v1860_v50 }
 0x415   :  { %1871 = vmatpush.msra.mxu2 %v1859_v59 }
 0x416   :  { %2816 = vmatmul.msk.f32.gmra.mxu2 %vm1473_vm14, %v1635_v19  ;;  %2864 = vmatmul.msk.f32.gmra.mxu3 %vm1473_vm14, %v1759_v41 }
 0x417   :  { %1872 = vmatpush.msra.mxu2 %v1858_v10 }
 0x419   :  { %1873 = vmatpush.msra.mxu2 %v1857_v23 }
 0x41b   :  { %1874 = vmatpush.msra.mxu2 %v1856_v48 }
 0x41d   :  { %1875 = vmatpush.msra.mxu2 %v1855_v56 }
 0x41e   :  { %2817 = vmatmul.msk.f32.gmra.mxu2 %vm1473_vm14, %v1636_v51  ;;  %2865 = vmatmul.msk.f32.gmra.mxu3 %vm1473_vm14, %v1760_v22 }
 0x41f   :  { %1876 = vmatpush.msra.mxu2 %v1854_v3  ;;  %v3104_v3 = vld [vmem:[%s4499_s15 + $0x28] sm:$0xff] }
 0x421   :  { %1877 = vmatpush.msra.mxu2 %v1853_v34  ;;  %v3111_v34 = vld [vmem:[%s4499_s15 + $0x60] sm:$0xff] }
 0x423   :  { %1878 = vmatpush.msra.mxu2 %v1852_v28 }
 0x425   :  { %1879 = vmatpush.msra.mxu2 %v1851_v7  ;;  %v3110_v7 = vld [vmem:[%s4499_s15 + $0x58] sm:$0xff] }
 0x426   :  { %2818 = vmatmul.msk.f32.gmra.mxu2 %vm1473_vm14, %v1637_v17  ;;  %2866 = vmatmul.msk.f32.gmra.mxu3 %vm1473_vm14, %v1761_v45 }
 0x427   :  { %1880 = vmatpush.msra.mxu2 %v1850_v54  ;;  %v3102_v54 = vld [vmem:[%s4499_s15 + $0x18] sm:$0xff] }
 0x429   :  { %1881 = vmatpush.msra.mxu2 %v1849_v14 }
 0x42b   :  { %1950 = vmatpush.msrb.mxu2 %v1930_v53 }
 0x491   :  { %v1670_v55 = vpop.f32.mrf.mxu2  ;;  %v1794_v40 = vpop.f32.mrf.mxu3 }
 0x492   :  { %v1682_v32 = vadd.f32 %v1670_v55, %v4294_v36  ;;  %v3105_v55 = vld [vmem:[%s4499_s15 + $0x30] sm:$0xff] }
 0x493   :  { %2057 = vmatpush.bf16.msra.mxu0 %v3105_v55  ;;  %v3119_v55 = vld [vmem:[%s4499_s15 + $0xa0] sm:$0xff] }
 0x494   :  { %v1806_v60 = vadd.f32 %v1794_v40, %v1682_v32  ;;  %v3112_v40 = vld [vmem:[%s4499_s15 + $0x68] sm:$0xff] }
 0x495   :  { %2137 = vmatpush.bf16.msrb.mxu1 %v3112_v40 }
 0x496   :  { %v4317_v27 = vadd.f32 %v3179_v33, %v1806_v60  ;;  %v1914_v60 = vld [vmem:[#allocation14] sm:$0x1] }
 0x497   :  { %2058 = vmatpush.bf16.msra.mxu0 %v3104_v3  ;;  %v2157_v3 = vld [vmem:[#allocation17 + $0x28] sm:$0xff] }
 0x498   :  { %v1832_v18 = vmul.f32 %v4317_v27, %v4317_v27  ;;  %v1818_v52 = vsel %vm1375_vm13, %v4317_v27, 0.0 }
 0x499   :  { %v1673_v63 = vpop.f32.mrf.mxu2  ;;  %v1797_v24 = vpop.f32.mrf.mxu3  ;;  %2138 = vmatpush.bf16.msrb.mxu1 %v3111_v34  ;;  %v2076_v34 = vld [vmem:[#allocation17 + $0x8] sm:$0xff] }
 0x49a   :  { %v1683_v31 = vadd.f32 %v1673_v63, %v4296_v29  ;;  %v1836_v36 = vsel %vm1375_vm13, %v1832_v18, 0.0  ;;  %v3101_v18 = vld [vmem:[%s4499_s15 + $0x10] sm:$0xff] }
 0x49c   :  { %v1807_v58 = vadd.f32 %v1797_v24, %v1683_v31  ;;  %v3103_v24 = vld [vmem:[%s4499_s15 + $0x20] sm:$0xff]  ;;  %v3109_v31 = vld [vmem:[%s4499_s15 + $0x50] sm:$0xff] }
 0x49d   :  { %2059 = vmatpush.bf16.msra.mxu0 %v3103_v24  ;;  %2139 = vmatpush.bf16.msrb.mxu1 %v3110_v7  ;;  %v3116_v24 = vld [vmem:[%s4499_s15 + $0x88] sm:$0xff]  ;;  %v2158_v7 = vld [vmem:[#allocation17 + $0x30] sm:$0xff] }
 0x49e   :  { %v4315_v61 = vadd.f32 %v3179_v33, %v1807_v58 }
 0x4a0   :  { %v1833_v26 = vmul.f32 %v4315_v61, %v4315_v61  ;;  %v1819_v5 = vsel %vm1375_vm13, %v4315_v61, 0.0 }
 0x4a1   :  { %v1676_v57 = vpop.f32.mrf.mxu2  ;;  %v1800_v62 = vpop.f32.mrf.mxu3  ;;  %v1820_v47 = vadd.f32 %v1819_v5, %v1818_v52  ;;  %2060 = vmatpush.bf16.msra.mxu0 %v3102_v54  ;;  %2140 = vmatpush.bf16.msrb.mxu1 %v3109_v31  ;;  %v3108_v5 = vld [vmem:[%s4499_s15 + $0x48] sm:$0xff]  ;;  %v3099_v52 = vld [vmem:[%s4499_s15] sm:$0xff]  ;;  %v2077_v54 = vld [vmem:[#allocation17 + $0x10] sm:$0xff] }
 0x4a2   :  { %v1684_v2 = vadd.f32 %v1676_v57, %v4298_v46  ;;  %v1837_v4 = vsel %vm1375_vm13, %v1833_v26, 0.0  ;;  %v1927_v26 = vld [vmem:[#allocation16] sm:$0x1]  ;;  %v3115_v31 = vld [vmem:[%s4499_s15 + $0x80] sm:$0xff] }
 0x4a3   :  { %v1838_v29 = vadd.f32 %v1837_v4, %v1836_v36  ;;  %v3106_v4 = vld [vmem:[%s4499_s15 + $0x38] sm:$0xff]  ;;  %v3123_v36 = vld [vmem:[%s4499_s15 + $0xc0] sm:$0xff] }
 0x4a4   :  { %v1808_v1 = vadd.f32 %v1800_v62, %v1684_v2 }
 0x4a5   :  { %2061 = vmatpush.bf16.msra.mxu0 %v3101_v18  ;;  %2141 = vmatpush.bf16.msrb.mxu1 %v3108_v5  ;;  %v2455_v18 = vld [vmem:[#allocation17 + $0x60] sm:$0xff] }
 0x4a6   :  { %v4319_v20 = vadd.f32 %v3179_v33, %v1808_v1 }
 0x4a8   :  { %v1834_v30 = vmul.f32 %v4319_v20, %v4319_v20  ;;  %v1821_v6 = vsel %vm1375_vm13, %v4319_v20, 0.0 }
 0x4a9   :  { %v1679_v0 = vpop.f32.mrf.mxu2  ;;  %v1803_v37 = vpop.f32.mrf.mxu3  ;;  %v1822_v12 = vadd.f32 %v1821_v6, %v1820_v47  ;;  %v3126_v6 = vld [vmem:[%s4499_s15 + $0xd8] sm:$0xff]  ;;  %v3124_v47 = vld [vmem:[%s4499_s15 + $0xc8] sm:$0xff] }
 0x4aa   :  { %v1685_v21 = vadd.f32 %v1679_v0, %v4300_v39  ;;  %v1839_v8 = vsel %vm1375_vm13, %v1834_v30, 0.0  ;;  %v3100_v30 = vld [vmem:[%s4499_s15 + $0x8] sm:$0xff] }
 0x4ab   :  { %v1840_v16 = vadd.f32 %v1839_v8, %v1838_v29  ;;  %2062 = vmatpush.bf16.msra.mxu0 %v3100_v30  ;;  %v3122_v8 = vld [vmem:[%s4499_s15 + $0xb8] sm:$0xff]  ;;  %v2456_v30 = vld [vmem:[#allocation17 + $0x68] sm:$0xff] }
 0x4ac   :  { %v1809_v9 = vadd.f32 %v1803_v37, %v1685_v21  ;;  %v3107_v21 = vld [vmem:[%s4499_s15 + $0x40] sm:$0xff] }
 0x4ad   :  { %2142 = vmatpush.bf16.msrb.mxu1 %v3107_v21  ;;  %v3180_v21 = vld [vmem:[#allocation2] ss:$0 sm:$0xff] }
 0x4ae   :  { %v4337_v13 = vadd.f32 %v3179_v33, %v1809_v9  ;;  %v3125_v9 = vld [vmem:[%s4499_s15 + $0xd0] sm:$0xff] }
 0x4af   :  { %2063 = vmatpush.bf16.msra.mxu0 %v3099_v52  ;;  %v3473_v52 = vmov 0  }
 0x4b0   :  { %v1824_v11 = vsel %vm1823_vm15, %v4337_v13, 0.0  ;;  %v1835_v46 = vmul.f32 %v4337_v13, %v4337_v13  ;;  %3178 = vset.pattern.permute.xlu0 %v3473_v52 }
 0x4b1   :  { %v1825_v38 = vadd.f32 %v1824_v11, %v1822_v12  ;;  %2143 = vmatpush.bf16.msrb.mxu1 %v3106_v4  ;;  %v3121_v11 = vld [vmem:[%s4499_s15 + $0xb0] sm:$0xff]  ;;  %2511 = vperm.xlu0 %3178, %v3180_v21  }
 0x4b2   :  { %v1841_v39 = vsel %vm1823_vm15, %v1835_v46, 0.0 }
 0x4b3   :  { %v1826_v15 = vrot.slane %v1825_v38, 4  ;;  %v1842_v49 = vadd.f32 %v1841_v39, %v1840_v16  ;;  %2436 = vmatpush.bf16.msrb.mxu0 %v3126_v6  ;;  %v2457_v6 = vld [vmem:[#allocation17 + $0x70] sm:$0xff] }
 0x4b5   :  { %v1827_v42 = vadd.f32 %v1826_v15, %v1825_v38  ;;  %v1843_v25 = vrot.slane %v1842_v49, 4 }
 0x4b7   :  { %v1828_v35 = vrot.slane %v1827_v42, 2  ;;  %v1844_v43 = vadd.f32 %v1843_v25, %v1842_v49  ;;  %2437 = vmatpush.bf16.msrb.mxu0 %v3125_v9  ;;  %v2326_v9 = vld [vmem:[#allocation17 + $0x40] sm:$0xff] }
 0x4b9   :  { %v1829_v19 = vadd.f32 %v1828_v35, %v1827_v42  ;;  %v1845_v41 = vrot.slane %v1844_v43, 2  ;;  %v3120_v42 = vld [vmem:[%s4499_s15 + $0xa8] sm:$0xff] }
 0x4bb   :  { %v1830_v51 = vrot.slane %v1829_v19, 1  ;;  %v1846_v22 = vadd.f32 %v1845_v41, %v1844_v43  ;;  %2438 = vmatpush.bf16.msrb.mxu0 %v3124_v47  ;;  %v2458_v47 = vld [vmem:[#allocation17 + $0x78] sm:$0xf] }
 0x4bd   :  { %v1831_v17 = vadd.f32 %v1830_v51, %v1829_v19  ;;  %v1847_v45 = vrot.slane %v1846_v22, 1 }
 0x4bf   :  { %2867 = vmatmul.msk.f32.vlgmr.msra.gmra.mxu2 %vm1375_vm13, %v1831_v17  ;;  %v1848_v44 = vadd.f32 %v1847_v45, %v1846_v22  ;;  %2439 = vmatpush.bf16.msrb.mxu0 %v3123_v36  ;;  %v2327_v36 = vld [vmem:[#allocation17 + $0x48] sm:$0xff] }
 0x4c1   :  { %2868 = vmatmul.msk.f32.vlgmr.msra.gmra.mxu1 %vm1375_vm13, %v1848_v44 }
 0x4c3   :  { %2440 = vmatpush.bf16.msrb.mxu0 %v3122_v8  ;;  %v2328_v8 = vld [vmem:[#allocation17 + $0x50] sm:$0xff] }
 0x4c7   :  { %2441 = vmatpush.bf16.msrb.mxu0 %v3121_v11 }
 0x4cb   :  { %2442 = vmatpush.bf16.msrb.mxu0 %v3120_v42 }
 0x523   :  { %v2512_v42 = vpop.permute.xlu0 %2511 }
 0x53e   :  { %v1907_v50 = vpop.f32.mrf.mxu1 }
 0x53f   :  { %v1910_v23 = vmul.f32 0.0025510204, %v1907_v50 }
 0x542   :  { %v1883_v59 = vpop.f32.mrf.mxu2 }
 0x543   :  { %v1886_v10 = vmul.f32 0.0025510204, %v1883_v59 }
 0x545   :  { %v1911_v48 = vmul.f32 %v1886_v10, %v1886_v10 }
 0x547   :  { %v1912_v56 = vsub.f32 %v1910_v23, %v1911_v48  ;;  %v2156_v23 = vld [vmem:[#allocation17 + $0x20] sm:$0xff] }
 0x548   :  { %v2075_v48 = vld [vmem:[#allocation17] sm:$0xff] }
 0x549   :  { %v1913_v28 = vmax.f32 %v1912_v56, 0.0  ;;  %v3118_v56 = vld [vmem:[%s4499_s15 + $0x98] sm:$0xff] }
 0x54b   :  { %v1915_v63 = vadd.f32 1e-05, %v1913_v28  ;;  %v3117_v28 = vld [vmem:[%s4499_s15 + $0x90] sm:$0xff] }
 0x54d   :  { %3183 = vrsqrt.f32 %v1915_v63  ;;  %vm1922_vm1 = vweird.f32 %v1915_v63 }
 0x553   :  { %v3184_v14 = vpop.eup %3183 }
 0x554   :  { %v1917_v32 = vmul.f32 %v3184_v14, %v1915_v63  ;;  %vm1923_vm0 = vweird.f32 %v3184_v14 }
 0x555   :  { %vm1924_vm2 = vmor %vm1922_vm1, %vm1923_vm0 }
 0x556   :  { %v1918_v58 = vmul.f32 %v3184_v14, %v1917_v32  ;;  %v3114_v32 = vld [vmem:[%s4499_s15 + $0x78] sm:$0xff] }
 0x558   :  { %v1919_v57 = vmul.f32 0.5, %v1918_v58  ;;  %v2159_v58 = vld [vmem:[#allocation17 + $0x38] sm:$0xf] }
 0x55a   :  { %v1920_v62 = vsub.f32 1.5, %v1919_v57  ;;  %v2078_v57 = vld [vmem:[#allocation17 + $0x18] sm:$0xf] }
 0x55c   :  { %v1921_v33 = vmul.f32 %v3184_v14, %v1920_v62  ;;  %v3113_v62 = vld [vmem:[%s4499_s15 + $0x70] sm:$0xff] }
 0x55e   :  { %v1925_v2 = vsel %vm1924_vm2, %v3184_v14, %v1921_v33 }
 0x55f   :  { %v1926_v1 = vmul.f32 %v1925_v2, %v1914_v60 }
 0x561   :  { %v1928_v0 = vmul.f32 %v1926_v1, %v1886_v10  ;;  %2869 = vmatmul.msk.f32.vlgmr.msrb.gmra.mxu2 %vm1931_vm3, %v1926_v1 }
 0x563   :  { %v1929_v37 = vsub.f32 %v1927_v26, %v1928_v0 }
 0x565   :  { %2870 = vmatmul.msk.f32.vlgmr.msrb.gmra.mxu3 %vm1931_vm3, %v1929_v37 }
 0x5e4   :  { %v1952_v29 = vpop.f32.mrf.mxu2 }
 0x5e5   :  { %v1978_v12 = vperm.slane %v1952_v29, 0  ;;  %v2329_v29 = vld [vmem:[#allocation17 + $0x58] sm:$0xf] }
 0x5e7   :  { %v1979_v16 = vmul.f32 %v1978_v12, %v4317_v27  ;;  %v1980_v38 = vmul.f32 %v1978_v12, %v4315_v61  ;;  %v1981_v61 = vmul.f32 %v1978_v12, %v4319_v20  ;;  %v1982_v27 = vmul.f32 %v1978_v12, %v4337_v13 }
 0x5e8   :  { %v1975_v46 = vpop.f32.mrf.mxu3 }
 0x5e9   :  { %v1983_v39 = vperm.slane %v1975_v46, 0 }
 0x5eb   :  { %v1984_v15 = vadd.f32 %v1983_v39, %v1979_v16  ;;  %v1985_v49 = vadd.f32 %v1983_v39, %v1980_v38  ;;  %v1986_v19 = vadd.f32 %v1983_v39, %v1981_v61  ;;  %v1987_v41 = vadd.f32 %v1983_v39, %v1982_v27 }
 0x5ed   :  { %v1988_v25 = vmax.f32 %v1984_v15, 0.0  ;;  %v1989_v35 = vmax.f32 %v1985_v49, 0.0  ;;  %v1990_v51 = vmax.f32 %v1986_v19, 0.0  ;;  %v1991_v22 = vmax.f32 %v1987_v41, 0.0 }
 0x5ef   :  { %v4412_v43 = vpack.c.bf16 %v1989_v35, %v1988_v25  ;;  %v1993_v17 = vpack.c.bf16 %v1991_v22, %v1990_v51 }
 0x5f1   :  { %2899 = vmatmul.msk.bf16.vlgmr.msra.gmra.mxu0 %vm1375_vm13, %v4412_v43  ;;  %2943 = vmatmul.msk.bf16.vlgmr.msrb.gmra.mxu1 %vm1375_vm13, %v4412_v43 }
 0x601   :  { %2900 = vmatmul.msk.bf16.gmra.mxu0 %vm1375_vm13, %v1993_v17  ;;  %2944 = vmatmul.msk.bf16.gmra.mxu1 %vm1375_vm13, %v1993_v17 }
 0x611   :  { %3046 = vmatmul.msk.bf16.vlgmr.msrb.gmra.mxu0 %vm1375_vm13, %v4412_v43 }
 0x621   :  { %3047 = vmatmul.msk.bf16.gmra.mxu0 %vm1375_vm13, %v1993_v17 }
 0x66e   :  { %v2065_v45 = vpop.f32.mrf.mxu0  ;;  %v2145_v44 = vpop.f32.mrf.mxu1 }
 0x676   :  { %v2067_v53 = vpop.f32.mrf.mxu0  ;;  %v2147_v20 = vpop.f32.mrf.mxu1 }
 0x67e   :  { %v2070_v50 = vpop.f32.mrf.mxu0  ;;  %v2150_v13 = vpop.f32.mrf.mxu1 }
 0x686   :  { %v2072_v59 = vpop.f32.mrf.mxu0  ;;  %v2152_v10 = vpop.f32.mrf.mxu1 }
 0x687   :  { %2945 = vmatpush.msk.msra.mxu2 %vm1312_vm9, %v2152_v10  ;;  %2950 = vmatpush.msk.msra.mxu3 %vm1312_vm9, %v2072_v59 }
 0x689   :  { %2189 = vmatpush.msra.mxu2 %v2150_v13  ;;  %2233 = vmatpush.msra.mxu3 %v2070_v50 }
 0x68b   :  { %2190 = vmatpush.msra.mxu2 %v2147_v20  ;;  %2234 = vmatpush.msra.mxu3 %v2067_v53 }
 0x68d   :  { %2191 = vmatpush.msra.mxu2 %v2145_v44  ;;  %2235 = vmatpush.msra.mxu3 %v2065_v45 }
 0x68e   :  { %2946 = vmatmul.msk.f32.vlgmr.msra.gmra.mxu2 %vm2160_vm4, %v2156_v23  ;;  %2951 = vmatmul.msk.f32.vlgmr.msra.gmra.mxu3 %vm2160_vm4, %v2075_v48  ;;  %v2444_v40 = vpop.f32.mrf.mxu0 }
 0x68f   :  { %2307 = vmatpush.bf16.msrb.mxu2 %v3119_v55 }
 0x693   :  { %2308 = vmatpush.bf16.msrb.mxu2 %v3118_v56 }
 0x696   :  { %2947 = vmatmul.msk.f32.gmra.mxu2 %vm2160_vm4, %v2157_v3  ;;  %2952 = vmatmul.msk.f32.gmra.mxu3 %vm2160_vm4, %v2076_v34  ;;  %v2446_v63 = vpop.f32.mrf.mxu0 }
 0x697   :  { %2309 = vmatpush.bf16.msrb.mxu2 %v3117_v28 }
 0x69b   :  { %2310 = vmatpush.bf16.msrb.mxu2 %v3116_v24 }
 0x69e   :  { %2948 = vmatmul.msk.f32.gmra.mxu2 %vm2160_vm4, %v2158_v7  ;;  %2953 = vmatmul.msk.f32.gmra.mxu3 %vm2160_vm4, %v2077_v54  ;;  %v2449_v14 = vpop.f32.mrf.mxu0 }
 0x69f   :  { %2311 = vmatpush.bf16.msrb.mxu2 %v3115_v31 }
 0x6a3   :  { %2312 = vmatpush.bf16.msrb.mxu2 %v3114_v32 }
 0x6a6   :  { %2949 = vmatmul.msk.f32.gmra.mxu2 %vm2160_vm4, %v2159_v58  ;;  %2954 = vmatmul.msk.f32.gmra.mxu3 %vm2160_vm4, %v2078_v57  ;;  %v2451_v60 = vpop.f32.mrf.mxu0 }
 0x6a7   :  { %3048 = vmatpush.msk.msra.mxu1 %vm1312_vm9, %v2451_v60  ;;  %2313 = vmatpush.bf16.msrb.mxu2 %v3113_v62 }
 0x6a9   :  { %2487 = vmatpush.msra.mxu1 %v2449_v14 }
 0x6ab   :  { %2488 = vmatpush.msra.mxu1 %v2446_v63 }
 0x6ad   :  { %2489 = vmatpush.msra.mxu1 %v2444_v40 }
 0x6ae   :  { %2997 = vmatmul.msk.bf16.vlgmr.msrb.gmra.mxu2 %vm1375_vm13, %v4412_v43  ;;  %3049 = vmatmul.msk.f32.vlgmr.msra.gmra.mxu1 %vm2160_vm4, %v2455_v18 }
 0x6b6   :  { %3050 = vmatmul.msk.f32.gmra.mxu1 %vm2160_vm4, %v2456_v30 }
 0x6be   :  { %2998 = vmatmul.msk.bf16.gmra.mxu2 %vm1375_vm13, %v1993_v17  ;;  %3051 = vmatmul.msk.f32.gmra.mxu1 %vm2160_vm4, %v2457_v6 }
 0x6c6   :  { %3052 = vmatmul.msk.f32.gmra.mxu1 %vm2160_vm4, %v2458_v47 }
 0x711   :  { %v2193_v33 = vpop.f32.mrf.mxu2  ;;  %v2237_v12 = vpop.f32.mrf.mxu3 }
 0x712   :  { %v2238_v39 = vadd.f32 %v2237_v12, %v2193_v33 }
 0x719   :  { %v2196_v2 = vpop.f32.mrf.mxu2  ;;  %v2240_v11 = vpop.f32.mrf.mxu3 }
 0x71a   :  { %v2241_v61 = vadd.f32 %v2240_v11, %v2196_v2 }
 0x721   :  { %v2199_v1 = vpop.f32.mrf.mxu2  ;;  %v2243_v46 = vpop.f32.mrf.mxu3 }
 0x722   :  { %v2244_v44 = vadd.f32 %v2243_v46, %v2199_v1 }
 0x729   :  { %v2202_v26 = vpop.f32.mrf.mxu2  ;;  %v2246_v16 = vpop.f32.mrf.mxu3 }
 0x72a   :  { %v2247_v48 = vadd.f32 %v2246_v16, %v2202_v26 }
 0x72b   :  { %v2491_v38 = vpop.f32.mrf.mxu1 }
 0x731   :  { %v2315_v0 = vpop.f32.mrf.mxu2 }
 0x733   :  { %v2494_v35 = vpop.f32.mrf.mxu1 }
 0x739   :  { %v2317_v37 = vpop.f32.mrf.mxu2 }
 0x73b   :  { %v2497_v17 = vpop.f32.mrf.mxu1 }
 0x741   :  { %v2320_v5 = vpop.f32.mrf.mxu2 }
 0x743   :  { %v2500_v34 = vpop.f32.mrf.mxu1 }
 0x749   :  { %v2322_v4 = vpop.f32.mrf.mxu2 }
 0x74a   :  { %2999 = vmatpush.msk.msrb.mxu3 %vm1312_vm9, %v2322_v4 }
 0x74c   :  { %2358 = vmatpush.msrb.mxu3 %v2320_v5 }
 0x74e   :  { %2359 = vmatpush.msrb.mxu3 %v2317_v37 }
 0x750   :  { %2360 = vmatpush.msrb.mxu3 %v2315_v0 }
 0x751   :  { %3000 = vmatmul.msk.f32.vlgmr.msrb.gmra.mxu3 %vm2160_vm4, %v2326_v9 }
 0x759   :  { %3001 = vmatmul.msk.f32.gmra.mxu3 %vm2160_vm4, %v2327_v36 }
 0x761   :  { %3002 = vmatmul.msk.f32.gmra.mxu3 %vm2160_vm4, %v2328_v8 }
 0x769   :  { %3003 = vmatmul.msk.f32.gmra.mxu3 %vm2160_vm4, %v2329_v29 }
 0x7d4   :  { %v2362_v15 = vpop.f32.mrf.mxu3 }
 0x7d5   :  { %v2374_v49 = vadd.f32 %v2362_v15, %v2238_v39 }
 0x7d7   :  { %v2503_v25 = vadd.f32 %v2491_v38, %v2374_v49 }
 0x7d9   :  { %v2514_v43 = vadd.f32 %v2512_v42, %v2503_v25 }
 0x7db   :  { %v3053_v27 = vmul.f32 -1.442695, %v2514_v43 }
 0x7dc   :  { %v2365_v19 = vpop.f32.mrf.mxu3 }
 0x7dd   :  { %3185 = vpow2.f32 %v3053_v27  ;;  %v2375_v41 = vadd.f32 %v2365_v19, %v2241_v61 }
 0x7df   :  { %v2504_v51 = vadd.f32 %v2494_v35, %v2375_v41 }
 0x7e1   :  { %v2515_v22 = vadd.f32 %v2512_v42, %v2504_v51 }
 0x7e3   :  { %v3186_v45 = vpop.eup %3185  ;;  %v3054_v53 = vmul.f32 -1.442695, %v2515_v22 }
 0x7e4   :  { %v2530_v20 = vadd.f32 1.0, %v3186_v45  ;;  %v2368_v50 = vpop.f32.mrf.mxu3 }
 0x7e5   :  { %3187 = vpow2.f32 %v3054_v53  ;;  %v2376_v13 = vadd.f32 %v2368_v50, %v2244_v44 }
 0x7e6   :  { %3189 = vrcp.f32 %v2530_v20  ;;  %v2545_v54 = vand.u32 2147483648, %v2530_v20  ;;  %v2543_v14 = vand.u32 2147483647, %v2530_v20  ;;  %vm2539_vm6 = vweird.f32 %v2530_v20 }
 0x7e7   :  { %v2505_v59 = vadd.f32 %v2497_v17, %v2376_v13 }
 0x7e8   :  { %v2546_v33 = vor.u32 1.1754944e-38, %v2545_v54  ;;  %vm2544_vm9 = vcmp.eq.f32.partialorder %v2543_v14, 8.507059e+37 }
 0x7e9   :  { %v2516_v10 = vadd.f32 %v2512_v42, %v2505_v59 }
 0x7eb   :  { %v3188_v23 = vpop.eup %3187  ;;  %v3055_v55 = vmul.f32 -1.442695, %v2516_v10 }
 0x7ec   :  { %v3190_v40 = vpop.eup %3189  ;;  %v2531_v56 = vadd.f32 1.0, %v3188_v23  ;;  %v2371_v3 = vpop.f32.mrf.mxu3 }
 0x7ed   :  { %v2535_v28 = vmul.f32 %v3190_v40, %v2530_v20  ;;  %3191 = vpow2.f32 %v3055_v55  ;;  %v2377_v63 = vadd.f32 %v2371_v3, %v2247_v48  ;;  %vm2540_vm5 = vweird.f32 %v3190_v40 }
 0x7ee   :  { %3193 = vrcp.f32 %v2531_v56  ;;  %vm2541_vm8 = vmor %vm2539_vm6, %vm2540_vm5  ;;  %v2560_v18 = vand.u32 2147483648, %v2531_v56  ;;  %v2558_v30 = vand.u32 2147483647, %v2531_v56  ;;  %vm2554_vm11 = vweird.f32 %v2531_v56 }
 0x7ef   :  { %v2536_v24 = vsub.f32 1.0, %v2535_v28  ;;  %v2506_v7 = vadd.f32 %v2500_v34, %v2377_v63  ;;  %vm2598_vm5 = vcmask 453632  }
 0x7f0   :  { %v2561_v6 = vor.u32 1.1754944e-38, %v2560_v18  ;;  %vm2559_vm13 = vcmp.eq.f32.partialorder %v2558_v30, 8.507059e+37 }
 0x7f1   :  { %v2537_v31 = vmul.f32 %v3190_v40, %v2536_v24  ;;  %v2517_v32 = vadd.f32 %v2512_v42, %v2506_v7 }
 0x7f3   :  { %v3192_v58 = vpop.eup %3191  ;;  %v2538_v57 = vadd.f32 %v3190_v40, %v2537_v31  ;;  %v3056_v62 = vmul.f32 -1.442695, %v2517_v32 }
 0x7f4   :  { %v3194_v60 = vpop.eup %3193  ;;  %v2532_v2 = vadd.f32 1.0, %v3192_v58 }
 0x7f5   :  { %v2542_v1 = vsel %vm2541_vm8, %v3190_v40, %v2538_v57  ;;  %v2550_v26 = vmul.f32 %v3194_v60, %v2531_v56  ;;  %3195 = vpow2.f32 %v3056_v62  ;;  %vm2555_vm10 = vweird.f32 %v3194_v60 }
 0x7f6   :  { %v2547_v0 = vsel %vm2544_vm9, %v2546_v33, %v2542_v1  ;;  %3197 = vrcp.f32 %v2532_v2  ;;  %vm2556_vm12 = vmor %vm2554_vm11, %vm2555_vm10  ;;  %v2575_v12 = vand.u32 2147483648, %v2532_v2  ;;  %v2573_v46 = vand.u32 2147483647, %v2532_v2 }
 0x7f7   :  { %2595 = vst.msk [vmem:[%s4501_s17] sm:$0xff] %vm2594_vm7, %v2547_v0  ;;  %v2551_v37 = vsub.f32 1.0, %v2550_v26  ;;  %vm2569_vm15 = vweird.f32 %v2532_v2 }
 0x7f8   :  { %v2576_v39 = vor.u32 1.1754944e-38, %v2575_v12  ;;  %vm2574_vm1 = vcmp.eq.f32.partialorder %v2573_v46, 8.507059e+37 }
 0x7f9   :  { %v2552_v5 = vmul.f32 %v3194_v60, %v2551_v37 }
 0x7fb   :  { %v3196_v21 = vpop.eup %3195  ;;  %v2553_v52 = vadd.f32 %v3194_v60, %v2552_v5 }
 0x7fc   :  { %v3198_v4 = vpop.eup %3197  ;;  %v2533_v9 = vadd.f32 1.0, %v3196_v21 }
 0x7fd   :  { %v2557_v47 = vsel %vm2556_vm12, %v3194_v60, %v2553_v52  ;;  %v2565_v36 = vmul.f32 %v3198_v4, %v2532_v2  ;;  %vm2570_vm14 = vweird.f32 %v3198_v4 }
 0x7fe   :  { %v2562_v8 = vsel %vm2559_vm13, %v2561_v6, %v2557_v47  ;;  %3199 = vrcp.f32 %v2533_v9  ;;  %vm2571_vm0 = vmor %vm2569_vm15, %vm2570_vm14  ;;  %v2590_v35 = vand.u32 2147483648, %v2533_v9  ;;  %v2588_v61 = vand.u32 2147483647, %v2533_v9 }
 0x7ff   :  { %2596 = vst.msk [vmem:[%s4501_s17 + $0x8] sm:$0xff] %vm2594_vm7, %v2562_v8  ;;  %v2566_v29 = vsub.f32 1.0, %v2565_v36  ;;  %vm2584_vm3 = vweird.f32 %v2533_v9 }
 0x800   :  { %v2591_v19 = vor.u32 1.1754944e-38, %v2590_v35  ;;  %vm2589_vm6 = vcmp.eq.f32.partialorder %v2588_v61, 8.507059e+37 }
 0x801   :  { %v2567_v11 = vmul.f32 %v3198_v4, %v2566_v29 }
 0x803   :  { %v2568_v16 = vadd.f32 %v3198_v4, %v2567_v11 }
 0x804   :  { %v3200_v38 = vpop.eup %3199 }
 0x805   :  { %v2572_v15 = vsel %vm2571_vm0, %v3198_v4, %v2568_v16  ;;  %v2580_v49 = vmul.f32 %v3200_v38, %v2533_v9  ;;  %vm2585_vm2 = vweird.f32 %v3200_v38 }
 0x806   :  { %v2577_v42 = vsel %vm2574_vm1, %v2576_v39, %v2572_v15  ;;  %vm2586_vm4 = vmor %vm2584_vm3, %vm2585_vm2 }
 0x807   :  { %2597 = vst.msk [vmem:[%s4501_s17 + $0x10] sm:$0xff] %vm2594_vm7, %v2577_v42  ;;  %v2581_v25 = vsub.f32 1.0, %v2580_v49 }
 0x809   :  { %v2582_v43 = vmul.f32 %v3200_v38, %v2581_v25 }
 0x80b   :  { %v2583_v27 = vadd.f32 %v3200_v38, %v2582_v43 }
 0x80d   :  { %v2587_v41 = vsel %vm2586_vm4, %v3200_v38, %v2583_v27 }
 0x80e   :  { %v2592_v51 = vsel %vm2589_vm6, %v2591_v19, %v2587_v41 }
 0x80f   :  { %2599 = vst.msk [vmem:[%s4501_s17 + $0x18] sm:$0xf] %vm2598_vm5, %v2592_v51 }
 0x810   :  { %2604 = vsyncpa [#allocation4], 1 }
 0x811   :  { %2605 = vsyncpa [#allocation6], 1 }
 0x812   :  { %2606 = vsyncpa [#allocation9], 1 }
 0x813   :  { %2607 = vsyncpa [#allocation12], 1 }
 0x814   :  { %2608 = vsyncpa [#allocation15], 1 }
 0x815   :  { %2609 = vsyncpa [#allocation18], 1 }

</bundles_post_ra>
